<compile_context>
chip_gen: v6e
topology: v6e:2x2x1
jax: 0.10.0
libtpu: 0.0.40
codegen_flags: <defaults>
</compile_context>

<pallas_src>
import jax
import jax.numpy as jnp
from jax import lax
from jax.experimental import pallas as pl
from jax.experimental.pallas import tpu as pltpu


# ----------------------------------------------------------------------------
# One-time probe, resolved at import (outside any jit trace): determine
# pltpu.roll's rotation direction on this backend; fall back to jnp.roll if it
# does not lower at all.
# ----------------------------------------------------------------------------
def _probe_roll():
    def probe(x_ref, o_ref):
        o_ref[...] = pltpu.roll(x_ref[...], 1, 1)

    x = jnp.broadcast_to(lax.iota(jnp.float32, 128)[None, :], (8, 128))
    try:
        out = jax.block_until_ready(
            pl.pallas_call(
                probe, out_shape=jax.ShapeDtypeStruct((8, 128), jnp.float32))(x))
        # numpy semantics (result[i] = x[i - shift])  =>  out[0, 0] == 127.
        return (True, -1) if float(out[0, 0]) == 127.0 else (True, 1)
    except Exception:
        return False, -1   # jnp.roll fallback (numpy semantics)


_USE_PLTPU_ROLL, _ROLL_SIGN = _probe_roll()


# ----------------------------------------------------------------------------
# Pallas kernel: the whole ResUnit (all conv layers + residual + ReLU) for one
# block of block_n whole images per grid step.  Activations are laid out as
# (cpad, Lb): channels on sublanes, flattened batch+spatial on the lane axis.
# ----------------------------------------------------------------------------
def make_resunit_kernel(W, n_layers, cpad, Lb):
    taps = [(dy, dx) for dy in (-1, 0, 1) for dx in (-1, 0, 1)]

    def lane_shift(v, delta):
        # shifted[:, p] = v[:, p + delta]; lanes that wrap (or cross an image
        # boundary inside the block) are boundary positions zeroed by the mask.
        # NOTE: only correct because every block holds WHOLE images.
        if _USE_PLTPU_ROLL:
            return pltpu.roll(v, (_ROLL_SIGN * delta) % Lb, 1)
        return jnp.roll(v, (-delta) % Lb, axis=1)

    def kernel(x_ref, m_ref, w_ref, b_ref, out_ref):
        act = x_ref[...]                                     # (cpad, Lb) f32

        for l in range(n_layers):
            # Center tap first (always valid: no roll, no mask) -> acc init.
            acc = jnp.dot(w_ref[9 * l + 4], act.astype(jnp.bfloat16),
                          preferred_element_type=jnp.float32)
            for t, (dy, dx) in enumerate(taps):
                if dy == 0 and dx == 0:
                    continue
                tap = lane_shift(act, dy * W + dx) * m_ref[t]   # f32 VPU/XLU
                acc = acc + jnp.dot(w_ref[9 * l + t], tap.astype(jnp.bfloat16),
                                    preferred_element_type=jnp.float32)
            acc = acc + b_ref[l]                             # bias (cpad, 1)
            if l < n_layers - 1:       # final conv+BN has no ReLU before residual
                act = jnp.maximum(acc, 0.0)
            else:
                act = acc

        # Residual add (identity == channel 0 of the resident input) + ReLU.
        out_ref[...] = jnp.maximum(act[0:1, :] + x_ref[0:1, :], 0.0)

    return kernel


# ----------------------------------------------------------------------------
# Parameter construction (deterministic) + Conv/BN folding + per-tap packing.
# ----------------------------------------------------------------------------
def init_params(key, depth, num_kernels, in_channels, eps=1e-5):
    chans = [(in_channels, num_kernels)]
    for _ in range(depth - 2):
        chans.append((num_kernels, num_kernels))
    chans.append((num_kernels, 1))
    n_layers = len(chans)

    cmax = max(max(ci, co) for ci, co in chans)
    cpad = max(16, ((cmax + 15) // 16) * 16)   # multiple of 16: native bf16 sublane tile

    w_packed = jnp.zeros((n_layers * 9, cpad, cpad), jnp.float32)
    b_packed = jnp.zeros((n_layers, cpad, 1), jnp.float32)
    folded_nchw = []
    for l, (cin, cout) in enumerate(chans):
        key, k1, k2, k3, k4, k5, k6 = jax.random.split(key, 7)
        w = 0.1 * jax.random.normal(k1, (cout, cin, 3, 3), jnp.float32)
        b = 0.1 * jax.random.normal(k2, (cout,), jnp.float32)
        gamma = 1.0 + 0.1 * jax.random.normal(k3, (cout,), jnp.float32)
        beta = 0.1 * jax.random.normal(k4, (cout,), jnp.float32)
        mean = 0.1 * jax.random.normal(k5, (cout,), jnp.float32)
        var = jnp.abs(jax.random.normal(k6, (cout,), jnp.float32)) + 0.5

        scale = gamma / jnp.sqrt(var + eps)        # eval-mode BatchNorm fold
        w_fold = w * scale[:, None, None, None]
        b_fold = (b - mean) * scale + beta

        # Per-tap (cout, cin) slabs; tap index t = (dy+1)*3 + (dx+1).
        w_taps = jnp.transpose(w_fold, (2, 3, 0, 1)).reshape(9, cout, cin)
        w_packed = w_packed.at[l * 9:(l + 1) * 9, :cout, :cin].set(w_taps)
        b_packed = b_packed.at[l, :cout, 0].set(b_fold)
        folded_nchw.append((w_fold, b_fold))

    return cpad, w_packed.astype(jnp.bfloat16), b_packed, folded_nchw


# ----------------------------------------------------------------------------
# Host-side helpers: boundary masks, batch-block selection, VMEM budget.
# ----------------------------------------------------------------------------
def _build_masks(H, W, cpad, block_n):
    hw = H * W
    pos = jnp.arange(hw, dtype=jnp.int32)
    hh, ww = pos // W, pos % W
    rows = []
    for dy in (-1, 0, 1):
        for dx in (-1, 0, 1):
            m = ((hh + dy >= 0) & (hh + dy < H) &
                 (ww + dx >= 0) & (ww + dx < W)).astype(jnp.float32)
            rows.append(m)
    m9 = jnp.tile(jnp.stack(rows), (1, block_n))          # (9, Lb), whole images
    return jnp.broadcast_to(m9[:, None, :], (9, cpad, block_n * hw))


def _pick_block_n(N, hw, cpad):
    """Largest whole-image batch block that keeps the lane block a multiple of
    128, fits a ~48-vreg f32 live-value budget (~4 live (cpad,Lb) arrays), and
    leaves >= 2 grid steps (DMA/compute overlap + v7x TensorCore sharding)."""
    max_lanes = max(hw, (48 * 4096) // (16 * cpad))
    divisors = [d for d in range(N, 0, -1) if N % d == 0]
    lane_ok = [d for d in divisors if (d * hw) % 128 == 0] or [N]
    fit = [d for d in lane_ok if d * hw <= max_lanes] or [min(lane_ok)]
    two = [d for d in fit if N // d >= 2] or fit
    return max(two)


def _vmem_bytes(cpad, Lb, n_layers):
    lanes = lambda n: ((n + 127) // 128) * 128
    f32, bf16 = 4, 2
    x_blk = 2 * cpad * Lb * f32                    # double-buffered input block
    o_blk = 2 * 8 * Lb * f32                       # (1, Lb) output, sublane-padded
    m_blk = 2 * 9 * cpad * Lb * f32                # constant-index masks
    w_blk = 2 * n_layers * 9 * cpad * lanes(cpad) * bf16
    b_blk = 2 * n_layers * cpad * lanes(1) * f32
    return x_blk + o_blk + m_blk + w_blk + b_blk


# ----------------------------------------------------------------------------
# Wrapper: NCHW <-> (cpad, N*H*W) plumbing + pallas_call.
# ----------------------------------------------------------------------------
def resunit_v2_forward(x_nchw, y_nchw, w_packed, b_packed, cpad, block_n=None):
    N, _, H, W = x_nchw.shape
    hw = H * W
    n_layers = b_packed.shape[0]

    xin = x_nchw if y_nchw is None else jnp.concatenate([x_nchw, y_nchw], axis=1)
    xin = xin.astype(jnp.float32)
    C0 = xin.shape[1]

    # (N, C0, H, W) -> (cpad, N*H*W): channels on sublanes, batch+spatial lanes.
    xc = jnp.transpose(xin, (1, 0, 2, 3)).reshape(C0, N * hw)
    xc = jnp.pad(xc, ((0, cpad - C0), (0, 0)))

    if block_n is None:
        block_n = _pick_block_n(N, hw, cpad)
    Lb = block_n * hw
    grid = (N // block_n,)
    masks = _build_masks(H, W, cpad, block_n)

    kernel = make_resunit_kernel(W, n_layers, cpad, Lb)
    vmem_limit = int(min(64 << 20, max(8 << 20, 2 * _vmem_bytes(cpad, Lb, n_layers))))

    out_flat = pl.pallas_call(
        kernel,
        out_shape=jax.ShapeDtypeStruct((1, N * hw), jnp.float32),
        grid_spec=pltpu.PrefetchScalarGridSpec(
            num_scalar_prefetch=0,
            grid=grid,
            in_specs=[
                pl.BlockSpec((cpad, Lb), lambda n: (0, n)),                      # x
                pl.BlockSpec((9, cpad, Lb), lambda n: (0, 0, 0)),                # masks
                pl.BlockSpec((n_layers * 9, cpad, cpad), lambda n: (0, 0, 0)),   # weights
                pl.BlockSpec((n_layers, cpad, 1), lambda n: (0, 0, 0)),          # biases
            ],
            out_specs=pl.BlockSpec((1, Lb), lambda n: (0, n)),
        ),
        compiler_params=pltpu.CompilerParams(
            dimension_semantics=("parallel",),
            vmem_limit_bytes=vmem_limit),
    )(xc, masks, w_packed, b_packed)

    return out_flat.reshape(N, 1, H, W)


# ----------------------------------------------------------------------------
# Pure-JAX reference (numerical sanity check), f32 throughout.
# ----------------------------------------------------------------------------
def ref_forward(x_nchw, y_nchw, folded_nchw):
    identity = x_nchw
    h = x_nchw if y_nchw is None else jnp.concatenate([x_nchw, y_nchw], axis=1)
    n_layers = len(folded_nchw)
    for i, (w, b) in enumerate(folded_nchw):
        h = lax.conv_general_dilated(
            h, w, window_strides=(1, 1), padding=((1, 1), (1, 1)),
            dimension_numbers=("NCHW", "OIHW", "NCHW"))
        h = h + b[None, :, None, None]
        if i < n_layers - 1:
            h = jnp.maximum(h, 0.0)
    return jnp.maximum(h + identity, 0.0)


if __name__ == "__main__":
    depth, num_kernels, in_channels = 3, 8, 4
    N, H, W = 2, 16, 16

    key = jax.random.PRNGKey(0)
    kx, ky, kp = jax.random.split(key, 3)
    x = jax.random.normal(kx, (N, 1, H, W), jnp.float32)
    y = jax.random.normal(ky, (N, in_channels - 1, H, W), jnp.float32)

    cpad, w_packed, b_packed, folded = init_params(kp, depth, num_kernels, in_channels)

    out = jax.block_until_ready(resunit_v2_forward(x, y, w_packed, b_packed, cpad))
    assert out.shape == (N, 1, H, W)

    ref = ref_forward(x, y, folded)
    max_err = float(jnp.max(jnp.abs(out - ref)))
    # bf16 matmul operands with f32 accumulation: tolerance loosened per review.
    assert max_err < 3e-2, f"mismatch vs reference: {max_err}"

    print("KERNEL_OK")
</pallas_src>

<mosaic_0001>
module attributes {stable_mosaic.version = 11 : i64} {
  func.func @probe(%arg0: memref<8x128xf32, #tpu.memory_space<vmem>>, %arg1: memref<8x128xf32, #tpu.memory_space<vmem>>) attributes {dimension_semantics = [], scalar_prefetch = 0 : i64, scratch_operands = 0 : i64, tpu.core_type = #tpu.core_type<tc>} {
    %c0 = arith.constant 0 : index
    %c0_0 = arith.constant 0 : index
    %0 = vector.load %arg0[%c0, %c0_0] : memref<8x128xf32, #tpu.memory_space<vmem>>, vector<8x128xf32>
    %c1_i32 = arith.constant 1 : i32
    %1 = tpu.dynamic_rotate %0 by %c1_i32 dim 1 : vector<8x128xf32>, i32 -> vector<8x128xf32>
    %c0_1 = arith.constant 0 : index
    %c0_2 = arith.constant 0 : index
    %2 = vector.load %arg1[%c0_1, %c0_2] : memref<8x128xf32, #tpu.memory_space<vmem>>, vector<8x128xf32>
    tpu.vector_store %arg1[%c0_1, %c0_2], %1 {strides = array<i32>} : memref<8x128xf32, #tpu.memory_space<vmem>>, vector<8x128xf32>,
    return
  }
}

module attributes {stable_mosaic.version = 11 : i64} {
  func.func @kernel(%arg0: i32, %arg1: memref<16x256xf32, #tpu.memory_space<vmem>>, %arg2: memref<9x16x256xf32, #tpu.memory_space<vmem>>, %arg3: memref<27x16x16xbf16, #tpu.memory_space<vmem>>, %arg4: memref<3x16x1xf32, #tpu.memory_space<vmem>>, %arg5: memref<1x256xf32, #tpu.memory_space<vmem>>) attributes {dimension_semantics = [#tpu.dimension_semantics<parallel>], iteration_bounds = array<i64: 2>, scalar_prefetch = 0 : i64, scratch_operands = 0 : i64, tpu.core_type = #tpu.core_type<tc>, window_params = [{transform_indices = @transform_0, window_bounds = array<i64: 16, 256>}, {pipeline_mode = #tpu.pipeline_mode<synchronous>, transform_indices = @transform_1, window_bounds = array<i64: 9, 16, 256>}, {pipeline_mode = #tpu.pipeline_mode<synchronous>, transform_indices = @transform_2, window_bounds = array<i64: 27, 16, 16>}, {pipeline_mode = #tpu.pipeline_mode<synchronous>, transform_indices = @transform_3, window_bounds = array<i64: 3, 16, 1>}, {transform_indices = @transform_4, window_bounds = array<i64: 1, 256>}]} {
    %c0 = arith.constant 0 : index
    %c0_0 = arith.constant 0 : index
    %0 = vector.load %arg1[%c0, %c0_0] : memref<16x256xf32, #tpu.memory_space<vmem>>, vector<16x256xf32>
    %c4 = arith.constant 4 : index
    %c0_1 = arith.constant 0 : index
    %c0_2 = arith.constant 0 : index
    %1 = vector.load %arg3[%c4, %c0_1, %c0_2] : memref<27x16x16xbf16, #tpu.memory_space<vmem>>, vector<1x16x16xbf16>
    %2 = vector.shape_cast %1 : vector<1x16x16xbf16> to vector<16x16xbf16>
    %3 = arith.truncf %0 : vector<16x256xf32> to vector<16x256xbf16>
    %cst = arith.constant dense<0.000000e+00> : vector<16x256xf32>
    %4 = tpu.matmul %2, %3, %cst {dimension_numbers = #tpu.dot_dimension_numbers<[1], [0], [0], [1], [0, 0, 1, 1], [], []>} : vector<16x16xbf16>, vector<16x256xbf16>, vector<16x256xf32> -> vector<16x256xf32>
    %5 = vector.extract_strided_slice %0 {offsets = [0, 239], sizes = [16, 17], strides = [1, 1]} : vector<16x256xf32> to vector<16x17xf32>
    %6 = vector.extract_strided_slice %0 {offsets = [0, 0], sizes = [16, 239], strides = [1, 1]} : vector<16x256xf32> to vector<16x239xf32>
    %7 = tpu.concatenate %5, %6 in 1 : vector<16x17xf32>, vector<16x239xf32> -> vector<16x256xf32>
    %c0_3 = arith.constant 0 : index
    %c0_4 = arith.constant 0 : index
    %c0_5 = arith.constant 0 : index
    %8 = vector.load %arg2[%c0_3, %c0_4, %c0_5] : memref<9x16x256xf32, #tpu.memory_space<vmem>>, vector<1x16x256xf32>
    %9 = vector.shape_cast %8 : vector<1x16x256xf32> to vector<16x256xf32>
    %10 = arith.mulf %7, %9 : vector<16x256xf32>
    %c0_6 = arith.constant 0 : index
    %c0_7 = arith.constant 0 : index
    %c0_8 = arith.constant 0 : index
    %11 = vector.load %arg3[%c0_6, %c0_7, %c0_8] : memref<27x16x16xbf16, #tpu.memory_space<vmem>>, vector<1x16x16xbf16>
    %12 = vector.shape_cast %11 : vector<1x16x16xbf16> to vector<16x16xbf16>
    %13 = arith.truncf %10 : vector<16x256xf32> to vector<16x256xbf16>
    %cst_9 = arith.constant dense<0.000000e+00> : vector<16x256xf32>
    %14 = tpu.matmul %12, %13, %cst_9 {dimension_numbers = #tpu.dot_dimension_numbers<[1], [0], [0], [1], [0, 0, 1, 1], [], []>} : vector<16x16xbf16>, vector<16x256xbf16>, vector<16x256xf32> -> vector<16x256xf32>
    %15 = arith.addf %4, %14 : vector<16x256xf32>
    %16 = vector.extract_strided_slice %0 {offsets = [0, 240], sizes = [16, 16], strides = [1, 1]} : vector<16x256xf32> to vector<16x16xf32>
    %17 = vector.extract_strided_slice %0 {offsets = [0, 0], sizes = [16, 240], strides = [1, 1]} : vector<16x256xf32> to vector<16x240xf32>
    %18 = tpu.concatenate %16, %17 in 1 : vector<16x16xf32>, vector<16x240xf32> -> vector<16x256xf32>
    %c1 = arith.constant 1 : index
    %c0_10 = arith.constant 0 : index
    %c0_11 = arith.constant 0 : index
    %19 = vector.load %arg2[%c1, %c0_10, %c0_11] : memref<9x16x256xf32, #tpu.memory_space<vmem>>, vector<1x16x256xf32>
    %20 = vector.shape_cast %19 : vector<1x16x256xf32> to vector<16x256xf32>
    %21 = arith.mulf %18, %20 : vector<16x256xf32>
    %c1_12 = arith.constant 1 : index
    %c0_13 = arith.constant 0 : index
    %c0_14 = arith.constant 0 : index
    %22 = vector.load %arg3[%c1_12, %c0_13, %c0_14] : memref<27x16x16xbf16, #tpu.memory_space<vmem>>, vector<1x16x16xbf16>
    %23 = vector.shape_cast %22 : vector<1x16x16xbf16> to vector<16x16xbf16>
    %24 = arith.truncf %21 : vector<16x256xf32> to vector<16x256xbf16>
    %cst_15 = arith.constant dense<0.000000e+00> : vector<16x256xf32>
    %25 = tpu.matmul %23, %24, %cst_15 {dimension_numbers = #tpu.dot_dimension_numbers<[1], [0], [0], [1], [0, 0, 1, 1], [], []>} : vector<16x16xbf16>, vector<16x256xbf16>, vector<16x256xf32> -> vector<16x256xf32>
    %26 = arith.addf %15, %25 : vector<16x256xf32>
    %27 = vector.extract_strided_slice %0 {offsets = [0, 241], sizes = [16, 15], strides = [1, 1]} : vector<16x256xf32> to vector<16x15xf32>
    %28 = vector.extract_strided_slice %0 {offsets = [0, 0], sizes = [16, 241], strides = [1, 1]} : vector<16x256xf32> to vector<16x241xf32>
    %29 = tpu.concatenate %27, %28 in 1 : vector<16x15xf32>, vector<16x241xf32> -> vector<16x256xf32>
    %c2 = arith.constant 2 : index
    %c0_16 = arith.constant 0 : index
    %c0_17 = arith.constant 0 : index
    %30 = vector.load %arg2[%c2, %c0_16, %c0_17] : memref<9x16x256xf32, #tpu.memory_space<vmem>>, vector<1x16x256xf32>
    %31 = vector.shape_cast %30 : vector<1x16x256xf32> to vector<16x256xf32>
    %32 = arith.mulf %29, %31 : vector<16x256xf32>
    %c2_18 = arith.constant 2 : index
    %c0_19 = arith.constant 0 : index
    %c0_20 = arith.constant 0 : index
    %33 = vector.load %arg3[%c2_18, %c0_19, %c0_20] : memref<27x16x16xbf16, #tpu.memory_space<vmem>>, vector<1x16x16xbf16>
    %34 = vector.shape_cast %33 : vector<1x16x16xbf16> to vector<16x16xbf16>
    %35 = arith.truncf %32 : vector<16x256xf32> to vector<16x256xbf16>
    %cst_21 = arith.constant dense<0.000000e+00> : vector<16x256xf32>
    %36 = tpu.matmul %34, %35, %cst_21 {dimension_numbers = #tpu.dot_dimension_numbers<[1], [0], [0], [1], [0, 0, 1, 1], [], []>} : vector<16x16xbf16>, vector<16x256xbf16>, vector<16x256xf32> -> vector<16x256xf32>
    %37 = arith.addf %26, %36 : vector<16x256xf32>
    %38 = vector.extract_strided_slice %0 {offsets = [0, 255], sizes = [16, 1], strides = [1, 1]} : vector<16x256xf32> to vector<16x1xf32>
    %39 = vector.extract_strided_slice %0 {offsets = [0, 0], sizes = [16, 255], strides = [1, 1]} : vector<16x256xf32> to vector<16x255xf32>
    %40 = tpu.concatenate %38, %39 in 1 : vector<16x1xf32>, vector<16x255xf32> -> vector<16x256xf32>
    %c3 = arith.constant 3 : index
    %c0_22 = arith.constant 0 : index
    %c0_23 = arith.constant 0 : index
    %41 = vector.load %arg2[%c3, %c0_22, %c0_23] : memref<9x16x256xf32, #tpu.memory_space<vmem>>, vector<1x16x256xf32>
    %42 = vector.shape_cast %41 : vector<1x16x256xf32> to vector<16x256xf32>
    %43 = arith.mulf %40, %42 : vector<16x256xf32>
    %c3_24 = arith.constant 3 : index
    %c0_25 = arith.constant 0 : index
    %c0_26 = arith.constant 0 : index
    %44 = vector.load %arg3[%c3_24, %c0_25, %c0_26] : memref<27x16x16xbf16, #tpu.memory_space<vmem>>, vector<1x16x16xbf16>
    %45 = vector.shape_cast %44 : vector<1x16x16xbf16> to vector<16x16xbf16>
    %46 = arith.truncf %43 : vector<16x256xf32> to vector<16x256xbf16>
    %cst_27 = arith.constant dense<0.000000e+00> : vector<16x256xf32>
    %47 = tpu.matmul %45, %46, %cst_27 {dimension_numbers = #tpu.dot_dimension_numbers<[1], [0], [0], [1], [0, 0, 1, 1], [], []>} : vector<16x16xbf16>, vector<16x256xbf16>, vector<16x256xf32> -> vector<16x256xf32>
    %48 = arith.addf %37, %47 : vector<16x256xf32>
    %49 = vector.extract_strided_slice %0 {offsets = [0, 1], sizes = [16, 255], strides = [1, 1]} : vector<16x256xf32> to vector<16x255xf32>
    %50 = vector.extract_strided_slice %0 {offsets = [0, 0], sizes = [16, 1], strides = [1, 1]} : vector<16x256xf32> to vector<16x1xf32>
    %51 = tpu.concatenate %49, %50 in 1 : vector<16x255xf32>, vector<16x1xf32> -> vector<16x256xf32>
    %c5 = arith.constant 5 : index
    %c0_28 = arith.constant 0 : index
    %c0_29 = arith.constant 0 : index
    %52 = vector.load %arg2[%c5, %c0_28, %c0_29] : memref<9x16x256xf32, #tpu.memory_space<vmem>>, vector<1x16x256xf32>
    %53 = vector.shape_cast %52 : vector<1x16x256xf32> to vector<16x256xf32>
    %54 = arith.mulf %51, %53 : vector<16x256xf32>
    %c5_30 = arith.constant 5 : index
    %c0_31 = arith.constant 0 : index
    %c0_32 = arith.constant 0 : index
    %55 = vector.load %arg3[%c5_30, %c0_31, %c0_32] : memref<27x16x16xbf16, #tpu.memory_space<vmem>>, vector<1x16x16xbf16>
    %56 = vector.shape_cast %55 : vector<1x16x16xbf16> to vector<16x16xbf16>
    %57 = arith.truncf %54 : vector<16x256xf32> to vector<16x256xbf16>
    %cst_33 = arith.constant dense<0.000000e+00> : vector<16x256xf32>
    %58 = tpu.matmul %56, %57, %cst_33 {dimension_numbers = #tpu.dot_dimension_numbers<[1], [0], [0], [1], [0, 0, 1, 1], [], []>} : vector<16x16xbf16>, vector<16x256xbf16>, vector<16x256xf32> -> vector<16x256xf32>
    %59 = arith.addf %48, %58 : vector<16x256xf32>
    %60 = vector.extract_strided_slice %0 {offsets = [0, 15], sizes = [16, 241], strides = [1, 1]} : vector<16x256xf32> to vector<16x241xf32>
    %61 = vector.extract_strided_slice %0 {offsets = [0, 0], sizes = [16, 15], strides = [1, 1]} : vector<16x256xf32> to vector<16x15xf32>
    %62 = tpu.concatenate %60, %61 in 1 : vector<16x241xf32>, vector<16x15xf32> -> vector<16x256xf32>
    %c6 = arith.constant 6 : index
    %c0_34 = arith.constant 0 : index
    %c0_35 = arith.constant 0 : index
    %63 = vector.load %arg2[%c6, %c0_34, %c0_35] : memref<9x16x256xf32, #tpu.memory_space<vmem>>, vector<1x16x256xf32>
    %64 = vector.shape_cast %63 : vector<1x16x256xf32> to vector<16x256xf32>
    %65 = arith.mulf %62, %64 : vector<16x256xf32>
    %c6_36 = arith.constant 6 : index
    %c0_37 = arith.constant 0 : index
    %c0_38 = arith.constant 0 : index
    %66 = vector.load %arg3[%c6_36, %c0_37, %c0_38] : memref<27x16x16xbf16, #tpu.memory_space<vmem>>, vector<1x16x16xbf16>
    %67 = vector.shape_cast %66 : vector<1x16x16xbf16> to vector<16x16xbf16>
    %68 = arith.truncf %65 : vector<16x256xf32> to vector<16x256xbf16>
    %cst_39 = arith.constant dense<0.000000e+00> : vector<16x256xf32>
    %69 = tpu.matmul %67, %68, %cst_39 {dimension_numbers = #tpu.dot_dimension_numbers<[1], [0], [0], [1], [0, 0, 1, 1], [], []>} : vector<16x16xbf16>, vector<16x256xbf16>, vector<16x256xf32> -> vector<16x256xf32>
    %70 = arith.addf %59, %69 : vector<16x256xf32>
    %71 = vector.extract_strided_slice %0 {offsets = [0, 16], sizes = [16, 240], strides = [1, 1]} : vector<16x256xf32> to vector<16x240xf32>
    %72 = vector.extract_strided_slice %0 {offsets = [0, 0], sizes = [16, 16], strides = [1, 1]} : vector<16x256xf32> to vector<16x16xf32>
    %73 = tpu.concatenate %71, %72 in 1 : vector<16x240xf32>, vector<16x16xf32> -> vector<16x256xf32>
    %c7 = arith.constant 7 : index
    %c0_40 = arith.constant 0 : index
    %c0_41 = arith.constant 0 : index
    %74 = vector.load %arg2[%c7, %c0_40, %c0_41] : memref<9x16x256xf32, #tpu.memory_space<vmem>>, vector<1x16x256xf32>
    %75 = vector.shape_cast %74 : vector<1x16x256xf32> to vector<16x256xf32>
    %76 = arith.mulf %73, %75 : vector<16x256xf32>
    %c7_42 = arith.constant 7 : index
    %c0_43 = arith.constant 0 : index
    %c0_44 = arith.constant 0 : index
    %77 = vector.load %arg3[%c7_42, %c0_43, %c0_44] : memref<27x16x16xbf16, #tpu.memory_space<vmem>>, vector<1x16x16xbf16>
    %78 = vector.shape_cast %77 : vector<1x16x16xbf16> to vector<16x16xbf16>
    %79 = arith.truncf %76 : vector<16x256xf32> to vector<16x256xbf16>
    %cst_45 = arith.constant dense<0.000000e+00> : vector<16x256xf32>
    %80 = tpu.matmul %78, %79, %cst_45 {dimension_numbers = #tpu.dot_dimension_numbers<[1], [0], [0], [1], [0, 0, 1, 1], [], []>} : vector<16x16xbf16>, vector<16x256xbf16>, vector<16x256xf32> -> vector<16x256xf32>
    %81 = arith.addf %70, %80 : vector<16x256xf32>
    %82 = vector.extract_strided_slice %0 {offsets = [0, 17], sizes = [16, 239], strides = [1, 1]} : vector<16x256xf32> to vector<16x239xf32>
    %83 = vector.extract_strided_slice %0 {offsets = [0, 0], sizes = [16, 17], strides = [1, 1]} : vector<16x256xf32> to vector<16x17xf32>
    %84 = tpu.concatenate %82, %83 in 1 : vector<16x239xf32>, vector<16x17xf32> -> vector<16x256xf32>
    %c8 = arith.constant 8 : index
    %c0_46 = arith.constant 0 : index
    %c0_47 = arith.constant 0 : index
    %85 = vector.load %arg2[%c8, %c0_46, %c0_47] : memref<9x16x256xf32, #tpu.memory_space<vmem>>, vector<1x16x256xf32>
    %86 = vector.shape_cast %85 : vector<1x16x256xf32> to vector<16x256xf32>
    %87 = arith.mulf %84, %86 : vector<16x256xf32>
    %c8_48 = arith.constant 8 : index
    %c0_49 = arith.constant 0 : index
    %c0_50 = arith.constant 0 : index
    %88 = vector.load %arg3[%c8_48, %c0_49, %c0_50] : memref<27x16x16xbf16, #tpu.memory_space<vmem>>, vector<1x16x16xbf16>
    %89 = vector.shape_cast %88 : vector<1x16x16xbf16> to vector<16x16xbf16>
    %90 = arith.truncf %87 : vector<16x256xf32> to vector<16x256xbf16>
    %cst_51 = arith.constant dense<0.000000e+00> : vector<16x256xf32>
    %91 = tpu.matmul %89, %90, %cst_51 {dimension_numbers = #tpu.dot_dimension_numbers<[1], [0], [0], [1], [0, 0, 1, 1], [], []>} : vector<16x16xbf16>, vector<16x256xbf16>, vector<16x256xf32> -> vector<16x256xf32>
    %92 = arith.addf %81, %91 : vector<16x256xf32>
    %c0_52 = arith.constant 0 : index
    %c0_53 = arith.constant 0 : index
    %c0_54 = arith.constant 0 : index
    %93 = vector.load %arg4[%c0_52, %c0_53, %c0_54] : memref<3x16x1xf32, #tpu.memory_space<vmem>>, vector<1x16x1xf32>
    %94 = vector.shape_cast %93 : vector<1x16x1xf32> to vector<16x1xf32>
    %95 = vector.broadcast %94 : vector<16x1xf32> to vector<16x256xf32>
    %96 = arith.addf %92, %95 : vector<16x256xf32>
    %cst_55 = arith.constant 0.000000e+00 : f32
    %97 = vector.broadcast %cst_55 : f32 to vector<16x256xf32>
    %98 = arith.maximumf %96, %97 : vector<16x256xf32>
    %c13 = arith.constant 13 : index
    %c0_56 = arith.constant 0 : index
    %c0_57 = arith.constant 0 : index
    %99 = vector.load %arg3[%c13, %c0_56, %c0_57] : memref<27x16x16xbf16, #tpu.memory_space<vmem>>, vector<1x16x16xbf16>
    %100 = vector.shape_cast %99 : vector<1x16x16xbf16> to vector<16x16xbf16>
    %101 = arith.truncf %98 : vector<16x256xf32> to vector<16x256xbf16>
    %cst_58 = arith.constant dense<0.000000e+00> : vector<16x256xf32>
    %102 = tpu.matmul %100, %101, %cst_58 {dimension_numbers = #tpu.dot_dimension_numbers<[1], [0], [0], [1], [0, 0, 1, 1], [], []>} : vector<16x16xbf16>, vector<16x256xbf16>, vector<16x256xf32> -> vector<16x256xf32>
    %103 = vector.extract_strided_slice %98 {offsets = [0, 239], sizes = [16, 17], strides = [1, 1]} : vector<16x256xf32> to vector<16x17xf32>
    %104 = vector.extract_strided_slice %98 {offsets = [0, 0], sizes = [16, 239], strides = [1, 1]} : vector<16x256xf32> to vector<16x239xf32>
    %105 = tpu.concatenate %103, %104 in 1 : vector<16x17xf32>, vector<16x239xf32> -> vector<16x256xf32>
    %c0_59 = arith.constant 0 : index
    %c0_60 = arith.constant 0 : index
    %c0_61 = arith.constant 0 : index
    %106 = vector.load %arg2[%c0_59, %c0_60, %c0_61] : memref<9x16x256xf32, #tpu.memory_space<vmem>>, vector<1x16x256xf32>
    %107 = vector.shape_cast %106 : vector<1x16x256xf32> to vector<16x256xf32>
    %108 = arith.mulf %105, %107 : vector<16x256xf32>
    %c9 = arith.constant 9 : index
    %c0_62 = arith.constant 0 : index
    %c0_63 = arith.constant 0 : index
    %109 = vector.load %arg3[%c9, %c0_62, %c0_63] : memref<27x16x16xbf16, #tpu.memory_space<vmem>>, vector<1x16x16xbf16>
    %110 = vector.shape_cast %109 : vector<1x16x16xbf16> to vector<16x16xbf16>
    %111 = arith.truncf %108 : vector<16x256xf32> to vector<16x256xbf16>
    %cst_64 = arith.constant dense<0.000000e+00> : vector<16x256xf32>
    %112 = tpu.matmul %110, %111, %cst_64 {dimension_numbers = #tpu.dot_dimension_numbers<[1], [0], [0], [1], [0, 0, 1, 1], [], []>} : vector<16x16xbf16>, vector<16x256xbf16>, vector<16x256xf32> -> vector<16x256xf32>
    %113 = arith.addf %102, %112 : vector<16x256xf32>
    %114 = vector.extract_strided_slice %98 {offsets = [0, 240], sizes = [16, 16], strides = [1, 1]} : vector<16x256xf32> to vector<16x16xf32>
    %115 = vector.extract_strided_slice %98 {offsets = [0, 0], sizes = [16, 240], strides = [1, 1]} : vector<16x256xf32> to vector<16x240xf32>
    %116 = tpu.concatenate %114, %115 in 1 : vector<16x16xf32>, vector<16x240xf32> -> vector<16x256xf32>
    %c1_65 = arith.constant 1 : index
    %c0_66 = arith.constant 0 : index
    %c0_67 = arith.constant 0 : index
    %117 = vector.load %arg2[%c1_65, %c0_66, %c0_67] : memref<9x16x256xf32, #tpu.memory_space<vmem>>, vector<1x16x256xf32>
    %118 = vector.shape_cast %117 : vector<1x16x256xf32> to vector<16x256xf32>
    %119 = arith.mulf %116, %118 : vector<16x256xf32>
    %c10 = arith.constant 10 : index
    %c0_68 = arith.constant 0 : index
    %c0_69 = arith.constant 0 : index
    %120 = vector.load %arg3[%c10, %c0_68, %c0_69] : memref<27x16x16xbf16, #tpu.memory_space<vmem>>, vector<1x16x16xbf16>
    %121 = vector.shape_cast %120 : vector<1x16x16xbf16> to vector<16x16xbf16>
    %122 = arith.truncf %119 : vector<16x256xf32> to vector<16x256xbf16>
    %cst_70 = arith.constant dense<0.000000e+00> : vector<16x256xf32>
    %123 = tpu.matmul %121, %122, %cst_70 {dimension_numbers = #tpu.dot_dimension_numbers<[1], [0], [0], [1], [0, 0, 1, 1], [], []>} : vector<16x16xbf16>, vector<16x256xbf16>, vector<16x256xf32> -> vector<16x256xf32>
    %124 = arith.addf %113, %123 : vector<16x256xf32>
    %125 = vector.extract_strided_slice %98 {offsets = [0, 241], sizes = [16, 15], strides = [1, 1]} : vector<16x256xf32> to vector<16x15xf32>
    %126 = vector.extract_strided_slice %98 {offsets = [0, 0], sizes = [16, 241], strides = [1, 1]} : vector<16x256xf32> to vector<16x241xf32>
    %127 = tpu.concatenate %125, %126 in 1 : vector<16x15xf32>, vector<16x241xf32> -> vector<16x256xf32>
    %c2_71 = arith.constant 2 : index
    %c0_72 = arith.constant 0 : index
    %c0_73 = arith.constant 0 : index
    %128 = vector.load %arg2[%c2_71, %c0_72, %c0_73] : memref<9x16x256xf32, #tpu.memory_space<vmem>>, vector<1x16x256xf32>
    %129 = vector.shape_cast %128 : vector<1x16x256xf32> to vector<16x256xf32>
    %130 = arith.mulf %127, %129 : vector<16x256xf32>
    %c11 = arith.constant 11 : index
    %c0_74 = arith.constant 0 : index
    %c0_75 = arith.constant 0 : index
    %131 = vector.load %arg3[%c11, %c0_74, %c0_75] : memref<27x16x16xbf16, #tpu.memory_space<vmem>>, vector<1x16x16xbf16>
    %132 = vector.shape_cast %131 : vector<1x16x16xbf16> to vector<16x16xbf16>
    %133 = arith.truncf %130 : vector<16x256xf32> to vector<16x256xbf16>
    %cst_76 = arith.constant dense<0.000000e+00> : vector<16x256xf32>
    %134 = tpu.matmul %132, %133, %cst_76 {dimension_numbers = #tpu.dot_dimension_numbers<[1], [0], [0], [1], [0, 0, 1, 1], [], []>} : vector<16x16xbf16>, vector<16x256xbf16>, vector<16x256xf32> -> vector<16x256xf32>
    %135 = arith.addf %124, %134 : vector<16x256xf32>
    %136 = vector.extract_strided_slice %98 {offsets = [0, 255], sizes = [16, 1], strides = [1, 1]} : vector<16x256xf32> to vector<16x1xf32>
    %137 = vector.extract_strided_slice %98 {offsets = [0, 0], sizes = [16, 255], strides = [1, 1]} : vector<16x256xf32> to vector<16x255xf32>
    %138 = tpu.concatenate %136, %137 in 1 : vector<16x1xf32>, vector<16x255xf32> -> vector<16x256xf32>
    %c3_77 = arith.constant 3 : index
    %c0_78 = arith.constant 0 : index
    %c0_79 = arith.constant 0 : index
    %139 = vector.load %arg2[%c3_77, %c0_78, %c0_79] : memref<9x16x256xf32, #tpu.memory_space<vmem>>, vector<1x16x256xf32>
    %140 = vector.shape_cast %139 : vector<1x16x256xf32> to vector<16x256xf32>
    %141 = arith.mulf %138, %140 : vector<16x256xf32>
    %c12 = arith.constant 12 : index
    %c0_80 = arith.constant 0 : index
    %c0_81 = arith.constant 0 : index
    %142 = vector.load %arg3[%c12, %c0_80, %c0_81] : memref<27x16x16xbf16, #tpu.memory_space<vmem>>, vector<1x16x16xbf16>
    %143 = vector.shape_cast %142 : vector<1x16x16xbf16> to vector<16x16xbf16>
    %144 = arith.truncf %141 : vector<16x256xf32> to vector<16x256xbf16>
    %cst_82 = arith.constant dense<0.000000e+00> : vector<16x256xf32>
    %145 = tpu.matmul %143, %144, %cst_82 {dimension_numbers = #tpu.dot_dimension_numbers<[1], [0], [0], [1], [0, 0, 1, 1], [], []>} : vector<16x16xbf16>, vector<16x256xbf16>, vector<16x256xf32> -> vector<16x256xf32>
    %146 = arith.addf %135, %145 : vector<16x256xf32>
    %147 = vector.extract_strided_slice %98 {offsets = [0, 1], sizes = [16, 255], strides = [1, 1]} : vector<16x256xf32> to vector<16x255xf32>
    %148 = vector.extract_strided_slice %98 {offsets = [0, 0], sizes = [16, 1], strides = [1, 1]} : vector<16x256xf32> to vector<16x1xf32>
    %149 = tpu.concatenate %147, %148 in 1 : vector<16x255xf32>, vector<16x1xf32> -> vector<16x256xf32>
    %c5_83 = arith.constant 5 : index
    %c0_84 = arith.constant 0 : index
    %c0_85 = arith.constant 0 : index
    %150 = vector.load %arg2[%c5_83, %c0_84, %c0_85] : memref<9x16x256xf32, #tpu.memory_space<vmem>>, vector<1x16x256xf32>
    %151 = vector.shape_cast %150 : vector<1x16x256xf32> to vector<16x256xf32>
    %152 = arith.mulf %149, %151 : vector<16x256xf32>
    %c14 = arith.constant 14 : index
    %c0_86 = arith.constant 0 : index
    %c0_87 = arith.constant 0 : index
    %153 = vector.load %arg3[%c14, %c0_86, %c0_87] : memref<27x16x16xbf16, #tpu.memory_space<vmem>>, vector<1x16x16xbf16>
    %154 = vector.shape_cast %153 : vector<1x16x16xbf16> to vector<16x16xbf16>
    %155 = arith.truncf %152 : vector<16x256xf32> to vector<16x256xbf16>
    %cst_88 = arith.constant dense<0.000000e+00> : vector<16x256xf32>
    %156 = tpu.matmul %154, %155, %cst_88 {dimension_numbers = #tpu.dot_dimension_numbers<[1], [0], [0], [1], [0, 0, 1, 1], [], []>} : vector<16x16xbf16>, vector<16x256xbf16>, vector<16x256xf32> -> vector<16x256xf32>
    %157 = arith.addf %146, %156 : vector<16x256xf32>
    %158 = vector.extract_strided_slice %98 {offsets = [0, 15], sizes = [16, 241], strides = [1, 1]} : vector<16x256xf32> to vector<16x241xf32>
    %159 = vector.extract_strided_slice %98 {offsets = [0, 0], sizes = [16, 15], strides = [1, 1]} : vector<16x256xf32> to vector<16x15xf32>
    %160 = tpu.concatenate %158, %159 in 1 : vector<16x241xf32>, vector<16x15xf32> -> vector<16x256xf32>
    %c6_89 = arith.constant 6 : index
    %c0_90 = arith.constant 0 : index
    %c0_91 = arith.constant 0 : index
    %161 = vector.load %arg2[%c6_89, %c0_90, %c0_91] : memref<9x16x256xf32, #tpu.memory_space<vmem>>, vector<1x16x256xf32>
    %162 = vector.shape_cast %161 : vector<1x16x256xf32> to vector<16x256xf32>
    %163 = arith.mulf %160, %162 : vector<16x256xf32>
    %c15 = arith.constant 15 : index
    %c0_92 = arith.constant 0 : index
    %c0_93 = arith.constant 0 : index
    %164 = vector.load %arg3[%c15, %c0_92, %c0_93] : memref<27x16x16xbf16, #tpu.memory_space<vmem>>, vector<1x16x16xbf16>
    %165 = vector.shape_cast %164 : vector<1x16x16xbf16> to vector<16x16xbf16>
    %166 = arith.truncf %163 : vector<16x256xf32> to vector<16x256xbf16>
    %cst_94 = arith.constant dense<0.000000e+00> : vector<16x256xf32>
    %167 = tpu.matmul %165, %166, %cst_94 {dimension_numbers = #tpu.dot_dimension_numbers<[1], [0], [0], [1], [0, 0, 1, 1], [], []>} : vector<16x16xbf16>, vector<16x256xbf16>, vector<16x256xf32> -> vector<16x256xf32>
    %168 = arith.addf %157, %167 : vector<16x256xf32>
    %169 = vector.extract_strided_slice %98 {offsets = [0, 16], sizes = [16, 240], strides = [1, 1]} : vector<16x256xf32> to vector<16x240xf32>
    %170 = vector.extract_strided_slice %98 {offsets = [0, 0], sizes = [16, 16], strides = [1, 1]} : vector<16x256xf32> to vector<16x16xf32>
    %171 = tpu.concatenate %169, %170 in 1 : vector<16x240xf32>, vector<16x16xf32> -> vector<16x256xf32>
    %c7_95 = arith.constant 7 : index
    %c0_96 = arith.constant 0 : index
    %c0_97 = arith.constant 0 : index
    %172 = vector.load %arg2[%c7_95, %c0_96, %c0_97] : memref<9x16x256xf32, #tpu.memory_space<vmem>>, vector<1x16x256xf32>
    %173 = vector.shape_cast %172 : vector<1x16x256xf32> to vector<16x256xf32>
    %174 = arith.mulf %171, %173 : vector<16x256xf32>
    %c16 = arith.constant 16 : index
    %c0_98 = arith.constant 0 : index
    %c0_99 = arith.constant 0 : index
    %175 = vector.load %arg3[%c16, %c0_98, %c0_99] : memref<27x16x16xbf16, #tpu.memory_space<vmem>>, vector<1x16x16xbf16>
    %176 = vector.shape_cast %175 : vector<1x16x16xbf16> to vector<16x16xbf16>
    %177 = arith.truncf %174 : vector<16x256xf32> to vector<16x256xbf16>
    %cst_100 = arith.constant dense<0.000000e+00> : vector<16x256xf32>
    %178 = tpu.matmul %176, %177, %cst_100 {dimension_numbers = #tpu.dot_dimension_numbers<[1], [0], [0], [1], [0, 0, 1, 1], [], []>} : vector<16x16xbf16>, vector<16x256xbf16>, vector<16x256xf32> -> vector<16x256xf32>
    %179 = arith.addf %168, %178 : vector<16x256xf32>
    %180 = vector.extract_strided_slice %98 {offsets = [0, 17], sizes = [16, 239], strides = [1, 1]} : vector<16x256xf32> to vector<16x239xf32>
    %181 = vector.extract_strided_slice %98 {offsets = [0, 0], sizes = [16, 17], strides = [1, 1]} : vector<16x256xf32> to vector<16x17xf32>
    %182 = tpu.concatenate %180, %181 in 1 : vector<16x239xf32>, vector<16x17xf32> -> vector<16x256xf32>
    %c8_101 = arith.constant 8 : index
    %c0_102 = arith.constant 0 : index
    %c0_103 = arith.constant 0 : index
    %183 = vector.load %arg2[%c8_101, %c0_102, %c0_103] : memref<9x16x256xf32, #tpu.memory_space<vmem>>, vector<1x16x256xf32>
    %184 = vector.shape_cast %183 : vector<1x16x256xf32> to vector<16x256xf32>
    %185 = arith.mulf %182, %184 : vector<16x256xf32>
    %c17 = arith.constant 17 : index
    %c0_104 = arith.constant 0 : index
    %c0_105 = arith.constant 0 : index
    %186 = vector.load %arg3[%c17, %c0_104, %c0_105] : memref<27x16x16xbf16, #tpu.memory_space<vmem>>, vector<1x16x16xbf16>
    %187 = vector.shape_cast %186 : vector<1x16x16xbf16> to vector<16x16xbf16>
    %188 = arith.truncf %185 : vector<16x256xf32> to vector<16x256xbf16>
    %cst_106 = arith.constant dense<0.000000e+00> : vector<16x256xf32>
    %189 = tpu.matmul %187, %188, %cst_106 {dimension_numbers = #tpu.dot_dimension_numbers<[1], [0], [0], [1], [0, 0, 1, 1], [], []>} : vector<16x16xbf16>, vector<16x256xbf16>, vector<16x256xf32> -> vector<16x256xf32>
    %190 = arith.addf %179, %189 : vector<16x256xf32>
    %c1_107 = arith.constant 1 : index
    %c0_108 = arith.constant 0 : index
    %c0_109 = arith.constant 0 : index
    %191 = vector.load %arg4[%c1_107, %c0_108, %c0_109] : memref<3x16x1xf32, #tpu.memory_space<vmem>>, vector<1x16x1xf32>
    %192 = vector.shape_cast %191 : vector<1x16x1xf32> to vector<16x1xf32>
    %193 = vector.broadcast %192 : vector<16x1xf32> to vector<16x256xf32>
    %194 = arith.addf %190, %193 : vector<16x256xf32>
    %cst_110 = arith.constant 0.000000e+00 : f32
    %195 = vector.broadcast %cst_110 : f32 to vector<16x256xf32>
    %196 = arith.maximumf %194, %195 : vector<16x256xf32>
    %c22 = arith.constant 22 : index
    %c0_111 = arith.constant 0 : index
    %c0_112 = arith.constant 0 : index
    %197 = vector.load %arg3[%c22, %c0_111, %c0_112] : memref<27x16x16xbf16, #tpu.memory_space<vmem>>, vector<1x16x16xbf16>
    %198 = vector.shape_cast %197 : vector<1x16x16xbf16> to vector<16x16xbf16>
    %199 = arith.truncf %196 : vector<16x256xf32> to vector<16x256xbf16>
    %cst_113 = arith.constant dense<0.000000e+00> : vector<16x256xf32>
    %200 = tpu.matmul %198, %199, %cst_113 {dimension_numbers = #tpu.dot_dimension_numbers<[1], [0], [0], [1], [0, 0, 1, 1], [], []>} : vector<16x16xbf16>, vector<16x256xbf16>, vector<16x256xf32> -> vector<16x256xf32>
    %201 = vector.extract_strided_slice %196 {offsets = [0, 239], sizes = [16, 17], strides = [1, 1]} : vector<16x256xf32> to vector<16x17xf32>
    %202 = vector.extract_strided_slice %196 {offsets = [0, 0], sizes = [16, 239], strides = [1, 1]} : vector<16x256xf32> to vector<16x239xf32>
    %203 = tpu.concatenate %201, %202 in 1 : vector<16x17xf32>, vector<16x239xf32> -> vector<16x256xf32>
    %c0_114 = arith.constant 0 : index
    %c0_115 = arith.constant 0 : index
    %c0_116 = arith.constant 0 : index
    %204 = vector.load %arg2[%c0_114, %c0_115, %c0_116] : memref<9x16x256xf32, #tpu.memory_space<vmem>>, vector<1x16x256xf32>
    %205 = vector.shape_cast %204 : vector<1x16x256xf32> to vector<16x256xf32>
    %206 = arith.mulf %203, %205 : vector<16x256xf32>
    %c18 = arith.constant 18 : index
    %c0_117 = arith.constant 0 : index
    %c0_118 = arith.constant 0 : index
    %207 = vector.load %arg3[%c18, %c0_117, %c0_118] : memref<27x16x16xbf16, #tpu.memory_space<vmem>>, vector<1x16x16xbf16>
    %208 = vector.shape_cast %207 : vector<1x16x16xbf16> to vector<16x16xbf16>
    %209 = arith.truncf %206 : vector<16x256xf32> to vector<16x256xbf16>
    %cst_119 = arith.constant dense<0.000000e+00> : vector<16x256xf32>
    %210 = tpu.matmul %208, %209, %cst_119 {dimension_numbers = #tpu.dot_dimension_numbers<[1], [0], [0], [1], [0, 0, 1, 1], [], []>} : vector<16x16xbf16>, vector<16x256xbf16>, vector<16x256xf32> -> vector<16x256xf32>
    %211 = arith.addf %200, %210 : vector<16x256xf32>
    %212 = vector.extract_strided_slice %196 {offsets = [0, 240], sizes = [16, 16], strides = [1, 1]} : vector<16x256xf32> to vector<16x16xf32>
    %213 = vector.extract_strided_slice %196 {offsets = [0, 0], sizes = [16, 240], strides = [1, 1]} : vector<16x256xf32> to vector<16x240xf32>
    %214 = tpu.concatenate %212, %213 in 1 : vector<16x16xf32>, vector<16x240xf32> -> vector<16x256xf32>
    %c1_120 = arith.constant 1 : index
    %c0_121 = arith.constant 0 : index
    %c0_122 = arith.constant 0 : index
    %215 = vector.load %arg2[%c1_120, %c0_121, %c0_122] : memref<9x16x256xf32, #tpu.memory_space<vmem>>, vector<1x16x256xf32>
    %216 = vector.shape_cast %215 : vector<1x16x256xf32> to vector<16x256xf32>
    %217 = arith.mulf %214, %216 : vector<16x256xf32>
    %c19 = arith.constant 19 : index
    %c0_123 = arith.constant 0 : index
    %c0_124 = arith.constant 0 : index
    %218 = vector.load %arg3[%c19, %c0_123, %c0_124] : memref<27x16x16xbf16, #tpu.memory_space<vmem>>, vector<1x16x16xbf16>
    %219 = vector.shape_cast %218 : vector<1x16x16xbf16> to vector<16x16xbf16>
    %220 = arith.truncf %217 : vector<16x256xf32> to vector<16x256xbf16>
    %cst_125 = arith.constant dense<0.000000e+00> : vector<16x256xf32>
    %221 = tpu.matmul %219, %220, %cst_125 {dimension_numbers = #tpu.dot_dimension_numbers<[1], [0], [0], [1], [0, 0, 1, 1], [], []>} : vector<16x16xbf16>, vector<16x256xbf16>, vector<16x256xf32> -> vector<16x256xf32>
    %222 = arith.addf %211, %221 : vector<16x256xf32>
    %223 = vector.extract_strided_slice %196 {offsets = [0, 241], sizes = [16, 15], strides = [1, 1]} : vector<16x256xf32> to vector<16x15xf32>
    %224 = vector.extract_strided_slice %196 {offsets = [0, 0], sizes = [16, 241], strides = [1, 1]} : vector<16x256xf32> to vector<16x241xf32>
    %225 = tpu.concatenate %223, %224 in 1 : vector<16x15xf32>, vector<16x241xf32> -> vector<16x256xf32>
    %c2_126 = arith.constant 2 : index
    %c0_127 = arith.constant 0 : index
    %c0_128 = arith.constant 0 : index
    %226 = vector.load %arg2[%c2_126, %c0_127, %c0_128] : memref<9x16x256xf32, #tpu.memory_space<vmem>>, vector<1x16x256xf32>
    %227 = vector.shape_cast %226 : vector<1x16x256xf32> to vector<16x256xf32>
    %228 = arith.mulf %225, %227 : vector<16x256xf32>
    %c20 = arith.constant 20 : index
    %c0_129 = arith.constant 0 : index
    %c0_130 = arith.constant 0 : index
    %229 = vector.load %arg3[%c20, %c0_129, %c0_130] : memref<27x16x16xbf16, #tpu.memory_space<vmem>>, vector<1x16x16xbf16>
    %230 = vector.shape_cast %229 : vector<1x16x16xbf16> to vector<16x16xbf16>
    %231 = arith.truncf %228 : vector<16x256xf32> to vector<16x256xbf16>
    %cst_131 = arith.constant dense<0.000000e+00> : vector<16x256xf32>
    %232 = tpu.matmul %230, %231, %cst_131 {dimension_numbers = #tpu.dot_dimension_numbers<[1], [0], [0], [1], [0, 0, 1, 1], [], []>} : vector<16x16xbf16>, vector<16x256xbf16>, vector<16x256xf32> -> vector<16x256xf32>
    %233 = arith.addf %222, %232 : vector<16x256xf32>
    %234 = vector.extract_strided_slice %196 {offsets = [0, 255], sizes = [16, 1], strides = [1, 1]} : vector<16x256xf32> to vector<16x1xf32>
    %235 = vector.extract_strided_slice %196 {offsets = [0, 0], sizes = [16, 255], strides = [1, 1]} : vector<16x256xf32> to vector<16x255xf32>
    %236 = tpu.concatenate %234, %235 in 1 : vector<16x1xf32>, vector<16x255xf32> -> vector<16x256xf32>
    %c3_132 = arith.constant 3 : index
    %c0_133 = arith.constant 0 : index
    %c0_134 = arith.constant 0 : index
    %237 = vector.load %arg2[%c3_132, %c0_133, %c0_134] : memref<9x16x256xf32, #tpu.memory_space<vmem>>, vector<1x16x256xf32>
    %238 = vector.shape_cast %237 : vector<1x16x256xf32> to vector<16x256xf32>
    %239 = arith.mulf %236, %238 : vector<16x256xf32>
    %c21 = arith.constant 21 : index
    %c0_135 = arith.constant 0 : index
    %c0_136 = arith.constant 0 : index
    %240 = vector.load %arg3[%c21, %c0_135, %c0_136] : memref<27x16x16xbf16, #tpu.memory_space<vmem>>, vector<1x16x16xbf16>
    %241 = vector.shape_cast %240 : vector<1x16x16xbf16> to vector<16x16xbf16>
    %242 = arith.truncf %239 : vector<16x256xf32> to vector<16x256xbf16>
    %cst_137 = arith.constant dense<0.000000e+00> : vector<16x256xf32>
    %243 = tpu.matmul %241, %242, %cst_137 {dimension_numbers = #tpu.dot_dimension_numbers<[1], [0], [0], [1], [0, 0, 1, 1], [], []>} : vector<16x16xbf16>, vector<16x256xbf16>, vector<16x256xf32> -> vector<16x256xf32>
    %244 = arith.addf %233, %243 : vector<16x256xf32>
    %245 = vector.extract_strided_slice %196 {offsets = [0, 1], sizes = [16, 255], strides = [1, 1]} : vector<16x256xf32> to vector<16x255xf32>
    %246 = vector.extract_strided_slice %196 {offsets = [0, 0], sizes = [16, 1], strides = [1, 1]} : vector<16x256xf32> to vector<16x1xf32>
    %247 = tpu.concatenate %245, %246 in 1 : vector<16x255xf32>, vector<16x1xf32> -> vector<16x256xf32>
    %c5_138 = arith.constant 5 : index
    %c0_139 = arith.constant 0 : index
    %c0_140 = arith.constant 0 : index
    %248 = vector.load %arg2[%c5_138, %c0_139, %c0_140] : memref<9x16x256xf32, #tpu.memory_space<vmem>>, vector<1x16x256xf32>
    %249 = vector.shape_cast %248 : vector<1x16x256xf32> to vector<16x256xf32>
    %250 = arith.mulf %247, %249 : vector<16x256xf32>
    %c23 = arith.constant 23 : index
    %c0_141 = arith.constant 0 : index
    %c0_142 = arith.constant 0 : index
    %251 = vector.load %arg3[%c23, %c0_141, %c0_142] : memref<27x16x16xbf16, #tpu.memory_space<vmem>>, vector<1x16x16xbf16>
    %252 = vector.shape_cast %251 : vector<1x16x16xbf16> to vector<16x16xbf16>
    %253 = arith.truncf %250 : vector<16x256xf32> to vector<16x256xbf16>
    %cst_143 = arith.constant dense<0.000000e+00> : vector<16x256xf32>
    %254 = tpu.matmul %252, %253, %cst_143 {dimension_numbers = #tpu.dot_dimension_numbers<[1], [0], [0], [1], [0, 0, 1, 1], [], []>} : vector<16x16xbf16>, vector<16x256xbf16>, vector<16x256xf32> -> vector<16x256xf32>
    %255 = arith.addf %244, %254 : vector<16x256xf32>
    %256 = vector.extract_strided_slice %196 {offsets = [0, 15], sizes = [16, 241], strides = [1, 1]} : vector<16x256xf32> to vector<16x241xf32>
    %257 = vector.extract_strided_slice %196 {offsets = [0, 0], sizes = [16, 15], strides = [1, 1]} : vector<16x256xf32> to vector<16x15xf32>
    %258 = tpu.concatenate %256, %257 in 1 : vector<16x241xf32>, vector<16x15xf32> -> vector<16x256xf32>
    %c6_144 = arith.constant 6 : index
    %c0_145 = arith.constant 0 : index
    %c0_146 = arith.constant 0 : index
    %259 = vector.load %arg2[%c6_144, %c0_145, %c0_146] : memref<9x16x256xf32, #tpu.memory_space<vmem>>, vector<1x16x256xf32>
    %260 = vector.shape_cast %259 : vector<1x16x256xf32> to vector<16x256xf32>
    %261 = arith.mulf %258, %260 : vector<16x256xf32>
    %c24 = arith.constant 24 : index
    %c0_147 = arith.constant 0 : index
    %c0_148 = arith.constant 0 : index
    %262 = vector.load %arg3[%c24, %c0_147, %c0_148] : memref<27x16x16xbf16, #tpu.memory_space<vmem>>, vector<1x16x16xbf16>
    %263 = vector.shape_cast %262 : vector<1x16x16xbf16> to vector<16x16xbf16>
    %264 = arith.truncf %261 : vector<16x256xf32> to vector<16x256xbf16>
    %cst_149 = arith.constant dense<0.000000e+00> : vector<16x256xf32>
    %265 = tpu.matmul %263, %264, %cst_149 {dimension_numbers = #tpu.dot_dimension_numbers<[1], [0], [0], [1], [0, 0, 1, 1], [], []>} : vector<16x16xbf16>, vector<16x256xbf16>, vector<16x256xf32> -> vector<16x256xf32>
    %266 = arith.addf %255, %265 : vector<16x256xf32>
    %267 = vector.extract_strided_slice %196 {offsets = [0, 16], sizes = [16, 240], strides = [1, 1]} : vector<16x256xf32> to vector<16x240xf32>
    %268 = vector.extract_strided_slice %196 {offsets = [0, 0], sizes = [16, 16], strides = [1, 1]} : vector<16x256xf32> to vector<16x16xf32>
    %269 = tpu.concatenate %267, %268 in 1 : vector<16x240xf32>, vector<16x16xf32> -> vector<16x256xf32>
    %c7_150 = arith.constant 7 : index
    %c0_151 = arith.constant 0 : index
    %c0_152 = arith.constant 0 : index
    %270 = vector.load %arg2[%c7_150, %c0_151, %c0_152] : memref<9x16x256xf32, #tpu.memory_space<vmem>>, vector<1x16x256xf32>
    %271 = vector.shape_cast %270 : vector<1x16x256xf32> to vector<16x256xf32>
    %272 = arith.mulf %269, %271 : vector<16x256xf32>
    %c25 = arith.constant 25 : index
    %c0_153 = arith.constant 0 : index
    %c0_154 = arith.constant 0 : index
    %273 = vector.load %arg3[%c25, %c0_153, %c0_154] : memref<27x16x16xbf16, #tpu.memory_space<vmem>>, vector<1x16x16xbf16>
    %274 = vector.shape_cast %273 : vector<1x16x16xbf16> to vector<16x16xbf16>
    %275 = arith.truncf %272 : vector<16x256xf32> to vector<16x256xbf16>
    %cst_155 = arith.constant dense<0.000000e+00> : vector<16x256xf32>
    %276 = tpu.matmul %274, %275, %cst_155 {dimension_numbers = #tpu.dot_dimension_numbers<[1], [0], [0], [1], [0, 0, 1, 1], [], []>} : vector<16x16xbf16>, vector<16x256xbf16>, vector<16x256xf32> -> vector<16x256xf32>
    %277 = arith.addf %266, %276 : vector<16x256xf32>
    %278 = vector.extract_strided_slice %196 {offsets = [0, 17], sizes = [16, 239], strides = [1, 1]} : vector<16x256xf32> to vector<16x239xf32>
    %279 = vector.extract_strided_slice %196 {offsets = [0, 0], sizes = [16, 17], strides = [1, 1]} : vector<16x256xf32> to vector<16x17xf32>
    %280 = tpu.concatenate %278, %279 in 1 : vector<16x239xf32>, vector<16x17xf32> -> vector<16x256xf32>
    %c8_156 = arith.constant 8 : index
    %c0_157 = arith.constant 0 : index
    %c0_158 = arith.constant 0 : index
    %281 = vector.load %arg2[%c8_156, %c0_157, %c0_158] : memref<9x16x256xf32, #tpu.memory_space<vmem>>, vector<1x16x256xf32>
    %282 = vector.shape_cast %281 : vector<1x16x256xf32> to vector<16x256xf32>
    %283 = arith.mulf %280, %282 : vector<16x256xf32>
    %c26 = arith.constant 26 : index
    %c0_159 = arith.constant 0 : index
    %c0_160 = arith.constant 0 : index
    %284 = vector.load %arg3[%c26, %c0_159, %c0_160] : memref<27x16x16xbf16, #tpu.memory_space<vmem>>, vector<1x16x16xbf16>
    %285 = vector.shape_cast %284 : vector<1x16x16xbf16> to vector<16x16xbf16>
    %286 = arith.truncf %283 : vector<16x256xf32> to vector<16x256xbf16>
    %cst_161 = arith.constant dense<0.000000e+00> : vector<16x256xf32>
    %287 = tpu.matmul %285, %286, %cst_161 {dimension_numbers = #tpu.dot_dimension_numbers<[1], [0], [0], [1], [0, 0, 1, 1], [], []>} : vector<16x16xbf16>, vector<16x256xbf16>, vector<16x256xf32> -> vector<16x256xf32>
    %288 = arith.addf %277, %287 : vector<16x256xf32>
    %c2_162 = arith.constant 2 : index
    %c0_163 = arith.constant 0 : index
    %c0_164 = arith.constant 0 : index
    %289 = vector.load %arg4[%c2_162, %c0_163, %c0_164] : memref<3x16x1xf32, #tpu.memory_space<vmem>>, vector<1x16x1xf32>
    %290 = vector.shape_cast %289 : vector<1x16x1xf32> to vector<16x1xf32>
    %291 = vector.broadcast %290 : vector<16x1xf32> to vector<16x256xf32>
    %292 = arith.addf %288, %291 : vector<16x256xf32>
    %293 = vector.extract_strided_slice %292 {offsets = [0, 0], sizes = [1, 256], strides = [1, 1]} : vector<16x256xf32> to vector<1x256xf32>
    %c0_165 = arith.constant 0 : index
    %c0_166 = arith.constant 0 : index
    %294 = vector.load %arg1[%c0_165, %c0_166] : memref<16x256xf32, #tpu.memory_space<vmem>>, vector<1x256xf32>
    %295 = arith.addf %293, %294 : vector<1x256xf32>
    %cst_167 = arith.constant 0.000000e+00 : f32
    %296 = vector.broadcast %cst_167 : f32 to vector<1x256xf32>
    %297 = arith.maximumf %295, %296 : vector<1x256xf32>
    %c0_168 = arith.constant 0 : index
    %c0_169 = arith.constant 0 : index
    %298 = vector.load %arg5[%c0_168, %c0_169] : memref<1x256xf32, #tpu.memory_space<vmem>>, vector<1x256xf32>
    tpu.vector_store %arg5[%c0_168, %c0_169], %297 {strides = array<i32>} : memref<1x256xf32, #tpu.memory_space<vmem>>, vector<1x256xf32>,
    return
  }
  func.func @transform_0(%arg0: i32) -> (i32, i32) {
    %c0_i32 = arith.constant 0 : i32
    %c0_i32_0 = arith.constant 0 : i32
    return %c0_i32, %arg0 : i32, i32
  }
  func.func @transform_1(%arg0: i32) -> (i32, i32, i32) {
    %c0_i32 = arith.constant 0 : i32
    %c0_i32_0 = arith.constant 0 : i32
    %c0_i32_1 = arith.constant 0 : i32
    %c0_i32_2 = arith.constant 0 : i32
    return %c0_i32, %c0_i32_0, %c0_i32_1 : i32, i32, i32
  }
  func.func @transform_2(%arg0: i32) -> (i32, i32, i32) {
    %c0_i32 = arith.constant 0 : i32
    %c0_i32_0 = arith.constant 0 : i32
    %c0_i32_1 = arith.constant 0 : i32
    %c0_i32_2 = arith.constant 0 : i32
    return %c0_i32, %c0_i32_0, %c0_i32_1 : i32, i32, i32
  }
  func.func @transform_3(%arg0: i32) -> (i32, i32, i32) {
    %c0_i32 = arith.constant 0 : i32
    %c0_i32_0 = arith.constant 0 : i32
    %c0_i32_1 = arith.constant 0 : i32
    %c0_i32_2 = arith.constant 0 : i32
    return %c0_i32, %c0_i32_0, %c0_i32_1 : i32, i32, i32
  }
  func.func @transform_4(%arg0: i32) -> (i32, i32) {
    %c0_i32 = arith.constant 0 : i32
    %c0_i32_0 = arith.constant 0 : i32
    return %c0_i32, %arg0 : i32, i32
  }
}

</mosaic_0001>

<bundles_post_ra>
// kernel: tpu_custom_call.1
= control target key start
LH: loop header
LB: loop body
LE: loop exit
PB: predicated region body
PF: predicated region fallthrough
CT: control target
= control target key end

     0   :  { %6 = vsyncpa [#allocation3], 0  ;;  %s106_s0 = inlined_call_operand.hbm [shape: f32[8,128], index: 0, kind: input, shape index: {}]   ;;  %s107_s1 = inlined_call_operand.hbm [shape: f32[8,128], index: 1, kind: output, shape index: {}]  }
   0x1   :  { %7 = vsyncpa [#allocation4], 0  ;;  %s87_s6 = smov [#allocation2]  }
   0x2   :  { %s14_s7 = sshll.u32 %s87_s6, 4  ;;  %s15_s7 = int_to_ptr.vmem [resolvable:$true] %s14_s7 }
   0x3   :  { %s51_s8 = scalar_lea.vmem %s15_s7, 128  ;;  %p56_p1 = scmp.lt.s32.totalorder %s15_s7, %s15_s7 }
   0x4   :  { %p52_p0 = scmp.ne.s32.totalorder %s15_s7, %s51_s8  ;;  %p57_p2 = scmp.lt.s32.totalorder %s51_s8, %s51_s8 }
   0x6   :  { %p58_p3 = por %p57_p2, %p56_p1 }
   0x8   :  { %p59_p4 = pnand %p58_p3, %p52_p0 }
   0xa   :  { %62 = shalt.err (!%p59_p4)
}
   0xb   :  { %17 = dma.hbm_to_vmem [thread:$0]  %s106_s0, 128, %s15_s7, [#allocation3]  }
   0xc   :  { %83 = dma.done.wait [#allocation3], 128  }
   0xd   :  { %84 = vsyncadd [#allocation3], 4294967168  ;;  %v21_v0 = vld [vmem:[#allocation2] sm:$0xff]  ;;  %s88_s11 = smov 1   ;;  %s89_s12 = smov [#allocation5]  }
   0xe   :  { %22 = vrot.lane.b32.xlu0 %v21_v0, %s88_s11  ;;  %s31_s13 = sshll.u32 %s89_s12, 4  ;;  %s32_s13 = int_to_ptr.vmem [resolvable:$true] %s31_s13 }
   0xf   :  { %s63_s14 = scalar_lea.vmem %s32_s13, 128  ;;  %p68_p6 = scmp.lt.s32.totalorder %s32_s13, %s32_s13 }
  0x10   :  { %p64_p5 = scmp.ne.s32.totalorder %s32_s13, %s63_s14  ;;  %p69_p7 = scmp.lt.s32.totalorder %s63_s14, %s63_s14 }
  0x12   :  { %p70_p8 = por %p69_p7, %p68_p6 }
  0x14   :  { %p71_p9 = pnand %p70_p8, %p64_p5 }
  0x80   :  { %v23_v1 = vpop.permute.xlu0 %22 }
  0x81   :  { %24 = vst [vmem:[#allocation5] sm:$0xff] %v23_v1 }
  0x82   :  { %74 = shalt.err (!%p71_p9)
}
  0x83   :  { %34 = dma.vmem_to_hbm [thread:$0]  %s32_s13, 128, %s107_s1, [#allocation4]  }
  0x84   :  { %85 = dma.done.wait [#allocation4], 128  }
  0x85   :  { %86 = vsyncadd [#allocation4], 4294967168 }
  0x86   :  { %38 = vsyncpa [#allocation3], 1 }
  0x87   :  { %39 = vsyncpa [#allocation4], 1 }

// kernel: tpu_custom_call.1
= control target key start
LH: loop header
LB: loop body
LE: loop exit
PB: predicated region body
PF: predicated region fallthrough
CT: control target
= control target key end

     0   :  { %9 = vsyncpa [#allocation4], 0  ;;  %s3745_s0 = inlined_call_operand.vmem [shape: f32[16,512], index: 0, kind: input, shape index: {}]   ;;  %s3746_s1 = inlined_call_operand.vmem [shape: f32[9,16,256], index: 1, kind: input, shape index: {}]   ;;  %s3747_s2 = inlined_call_operand.vmem [shape: bf16[27,16,16], index: 2, kind: input, shape index: {}]   ;;  %s3748_s3 = inlined_call_operand.vmem [shape: f32[3,16,1], index: 3, kind: input, shape index: {}]   ;;  %s3749_s4 = inlined_call_operand.hbm [shape: f32[1,512], index: 4, kind: output, shape index: {}]  }
   0x1   :  { %11 = vsyncpa [#allocation4 + $0x1], 0  ;;  %s2909_s15 = smov 0   ;;  %s2911_s16 = smov 0  }
   0x2   :  { %s2913_s17 = smov 0   ;;  %s2915_s18 = smov 0  }
   0x3 LB: > { %s3750_s19 = sadd.s32 4294967295, %s2871_s18   ;;  %s2548_s20 = sadd.s32 4294967294, %s2871_s18   ;;  %s2871_s18 = sphi %s2915_s18, %s3792_s18   ;;  %s2867_s17 = sphi %s2913_s17, %s3791_s17   ;;  %s2863_s16 = sphi %s2911_s16, %s3790_s16   ;;  %s2859_s15 = sphi %s2909_s15, %s3789_s15  }
   0x4   : > { %s2932_s21 = sadd.s32 1, %s2871_s18   ;;  %s24_s22 = sadd.s32 1, %s2867_s17 }
   0x5   : > { %s21_s23 = ssub.s32 %s2871_s18, %s2932_s21  ;;  %p31_p0 = scmp.ne.s32.totalorder %s2867_s17, %s2863_s16 }
   0x6   : > { %p22_p1 = scmp.eq.s32.totalorder %s21_s23, 0  ;;  %p32_p2 = scmp.eq.s32.totalorder %s2871_s18, 0 }
   0x7   : > { %p124_p3 = scmp.eq.s32.totalorder %s3750_s19, 1  ;;  %p129_p4 = scmp.ne.s32.totalorder %s2863_s16, %s2859_s15 }
   0x8   : > { %s2945_s24 = scalar_select %p22_p1, %s2867_s17, %s24_s22  }
   0x9   : > { %p33_p5 = por %p32_p2, %p31_p0  ;;  %p2947_p6 = por %p124_p3, %p31_p0 }
   0xa   : > { %p130_p7 = scmp.eq.s32.totalorder %s2548_s20, 1  ;;  %p3765_p9 = scmp.ge.s32.totalorder %s2871_s18, 2 }
   0xc   : > { %p2951_p8 = por %p130_p7, %p129_p4  ;;  %155 = sbr.rel (%p3765_p9) target bundleno = 23 (0x17), region = 28 }
  0x11   : > { %158 = sbr.rel (!%p33_p5) target bundleno = 23 (0x17), region = 32  ;;  %s160_s27 = sand.u32 (%p33_p5), 1, %s2867_s17  }
  0x12   : > { %s2699_s28 = sshll.u32 (%p33_p5), %s2871_s18, 4  ;;  %s2551_s29 = sshll.u32 (%p33_p5), %s160_s27, 5 }
  0x13   : > { %s165_s6 = scalar_lea.vmem (%p33_p5), %s3745_s0, %s2699_s28  ;;  %s162_s7 = scalar_lea.vmem (%p33_p5), [#allocation2], %s2551_s29 }
  0x14   : > { %v178_v0 = vld [vmem:[%s165_s6] sm:$0xff] (%p33_p5)  ;;  %v180_v1 = vld [vmem:[%s165_s6 + $0x8] sm:$0xff] (%p33_p5) }
  0x15   : > { %v182_v2 = vld [vmem:[%s165_s6 + $0x20] sm:$0xff] (%p33_p5)  ;;  %179 = vst [vmem:[%s162_s7] sm:$0xff] (%p33_p5), %v178_v0  ;;  %181 = vst [vmem:[%s162_s7 + $0x8] sm:$0xff] (%p33_p5), %v180_v1  ;;  %v184_v3 = vld [vmem:[%s165_s6 + $0x28] sm:$0xff] (%p33_p5) }
  0x16   : > { %183 = vst [vmem:[%s162_s7 + $0x10] sm:$0xff] %v182_v2  ;;  %185 = vst [vmem:[%s162_s7 + $0x18] sm:$0xff] %v184_v3 }
  0x17 PF: > { %p2554_p10 = scmp.ge.s32.totalorder %s2871_s18, 1  ;;  %p190_p11 = scmp.lt.s32.totalorder %s2871_s18, 3 }
  0x19   : > { %p191_p12 = pnand %p2554_p10, %p190_p11 }
  0x1b   : > { %194 = sbr.rel (%p191_p12) target bundleno = 1212 (0x4bc), region = 55 }
  0x20   : > { %s2966_s8 = sand.u32 1, %s2863_s16   ;;  %s2873_s11 = smov 17   ;;  %v3755_v8 = vmov 0   ;;  %v2753_v11 = vld [vmem:[%s3747_s2 + $0x20] sm:$0xff]   ;;  %vm274_vm0 = vcmask 130048   ;;  %v988_v13 = vld [vmem:[%s3748_s3 + $0x8] sm:$0xff] }
  0x21   : > { %s2555_s9 = sshll.u32 %s2966_s8, 5  ;;  %310 = vmatprep.mubr.bf16.mxu0 %v3755_v8  ;;  %361 = vmatprep.mubr.bf16.mxu1 %v3755_v8  ;;  %s2875_s12 = smov 16   ;;  %v987_v12 = vld [vmem:[%s3748_s3] sm:$0xff]  ;;  %vm248_vm1 = vcmask 138240   ;;  %v3025_v16 = vld [vmem:[%s3746_s1 + $0x8] sm:$0xff]  ;;  %v3032_v19 = vld [vmem:[%s3746_s1 + $0x18] sm:$0xff] }
  0x22   : > { %s2969_s10 = scalar_lea.vmem [#allocation2], %s2555_s9  ;;  %2750 = vset.pattern.permute.xlu0 %v3755_v8  ;;  %2751 = vset.pattern.permute.xlu1 %v3755_v8  ;;  %s2876_s20 = smov 15   ;;  %v3037_v20 = vld [vmem:[%s3746_s1] sm:$0xff]  ;;  %v3042_v21 = vld [vmem:[%s3746_s1 + $0x10] sm:$0xff]  ;;  %v3061_v36 = vld [vmem:[%s3746_s1 + $0x28] sm:$0xff]  ;;  %vm469_vm2 = vcmask 121856  }
  0x23   : > { %v226_v4 = vld [vmem:[%s2969_s10 + $0x8] sm:$0xff]  ;;  %v225_v5 = vld [vmem:[%s2969_s10] sm:$0xff]  ;;  %v228_v6 = vld [vmem:[%s2969_s10 + $0x18] sm:$0xff]  ;;  %s3753_s22 = smov 1   ;;  %s2878_s23 = smov 127   ;;  %vm557_vm3 = vcmask 7168  }
  0x24   : > { %236 = vrot.lane.b32.xlu0 %v226_v4, %s2873_s11  ;;  %244 = vrot.lane.b32.xlu1 %v225_v5, %s2873_s11  ;;  %v227_v7 = vld [vmem:[%s2969_s10 + $0x10] sm:$0xff]  ;;  %v233_v9 = vpack.c.bf16 %v228_v6, %v226_v4  ;;  %s2879_s27 = smov 113   ;;  %s2880_s28 = smov 112   ;;  %v3053_v34 = vld [vmem:[%s3746_s1 + $0x20] sm:$0xff]  ;;  %vm643_vm4 = vcmask 1039360   ;;  %vm731_vm5 = vcmask 924672  }
  0x25   : > { %v232_v10 = vpack.c.bf16 %v227_v7, %v225_v5  ;;  %s3751_s29 = smov 111   ;;  %v2752_v35 = vld [vmem:[%s3747_s2] sm:$0xff]   ;;  %v3066_v37 = vld [vmem:[%s3746_s1 + $0x30] sm:$0xff]  ;;  %v3071_v38 = vld [vmem:[%s3746_s1 + $0x38] sm:$0xff]  ;;  %vm819_vm6 = vcmask 916480   ;;  %vm907_vm7 = vcmask 908288  }
  0x26   : > { %343 = vmatprep.subr.bf16.mxu1 %v233_v9  ;;  %v3086_v53 = vld [vmem:[%s3746_s1 + $0x40] sm:$0xff]  ;;  %v2754_v54 = vld [vmem:[%s3747_s2 + $0x8] sm:$0xff]   ;;  %v3099_v56 = vld [vmem:[%s3746_s1 + $0x50] sm:$0xff]  ;;  %s3776_s19 = smov 1   ;;  %s3778_s14 = smov 111  }
  0x27   : > { %344 = vmatpush1.bf16.msra.mxu1 %v232_v10  ;;  %v3094_v55 = vld [vmem:[%s3746_s1 + $0x48] sm:$0xff]  ;;  %v3104_v57 = vld [vmem:[%s3746_s1 + $0x58] sm:$0xff]  ;;  %v3119_v9 = vld [vmem:[%s3746_s1 + $0x60] sm:$0xff]  ;;  %s2469_s13 = scalar_lea.sflag [#allocation4], %s2966_s8  ;;  %s2883_s5 = smov [#allocation3]  }
  0x28   : > { %238 = vrot.lane.b32.xlu0 %v228_v6, %s2873_s11  ;;  %246 = vrot.lane.b32.xlu1 %v227_v7, %s2873_s11  ;;  %v2755_v10 = vld [vmem:[%s3747_s2 + $0x10] sm:$0xff]   ;;  %s2815_s6 = sshll.u32 %s2883_s5, 4  ;;  %s2816_s6 = int_to_ptr.vmem [resolvable:$false] %s2815_s6 }
  0x29   : > { %s2817_s7 = scalar_lea.vmem %s2816_s6, 64 }
  0x2a   : > { %2562 = vmatmul.mubr.msk.bf16.vlgmr.msra.gmra.mxu1 %vm274_vm0, %v2753_v11  ;;  %v3127_v11 = vld [vmem:[%s3746_s1 + $0x68] sm:$0xff] }
  0x2b   : > { %532 = vmatprep.mubr.bf16.mxu1 %v3755_v8 }
  0x2c   : > { %372 = vrot.lane.b32.xlu0 %v226_v4, %s2875_s12  ;;  %374 = vrot.lane.b32.xlu1 %v228_v6, %s2875_s12 }
  0x30   : > { %378 = vrot.lane.b32.xlu0 %v225_v5, %s2875_s12  ;;  %380 = vrot.lane.b32.xlu1 %v227_v7, %s2875_s12 }
  0x34   : > { %459 = vrot.lane.b32.xlu0 %v226_v4, %s2876_s20  ;;  %461 = vrot.lane.b32.xlu1 %v228_v6, %s2876_s20 }
  0x38   : > { %465 = vrot.lane.b32.xlu0 %v225_v5, %s2876_s20  ;;  %467 = vrot.lane.b32.xlu1 %v227_v7, %s2876_s20 }
  0x3c   : > { %547 = vrot.lane.b32.xlu0 %v226_v4, %s3753_s22  ;;  %549 = vrot.lane.b32.xlu1 %v228_v6, %s3753_s22 }
  0x40   : > { %553 = vrot.lane.b32.xlu0 %v225_v5, %s3753_s22  ;;  %555 = vrot.lane.b32.xlu1 %v227_v7, %s3753_s22 }
  0x44   : > { %635 = vrot.lane.b32.xlu0 %v225_v5, %s2878_s23  ;;  %637 = vrot.lane.b32.xlu1 %v226_v4, %s2878_s23 }
  0x48   : > { %639 = vrot.lane.b32.xlu0 %v227_v7, %s2878_s23  ;;  %641 = vrot.lane.b32.xlu1 %v228_v6, %s2878_s23 }
  0x4c   : > { %723 = vrot.lane.b32.xlu0 %v225_v5, %s2879_s27  ;;  %725 = vrot.lane.b32.xlu1 %v226_v4, %s2879_s27 }
  0x50   : > { %727 = vrot.lane.b32.xlu0 %v227_v7, %s2879_s27  ;;  %729 = vrot.lane.b32.xlu1 %v228_v6, %s2879_s27 }
  0x54   : > { %811 = vrot.lane.b32.xlu0 %v225_v5, %s2880_s28  ;;  %813 = vrot.lane.b32.xlu1 %v226_v4, %s2880_s28 }
  0x58   : > { %815 = vrot.lane.b32.xlu0 %v227_v7, %s2880_s28  ;;  %817 = vrot.lane.b32.xlu1 %v228_v6, %s2880_s28 }
  0x5c   : > { %899 = vrot.lane.b32.xlu0 %v225_v5, %s3751_s29  ;;  %901 = vrot.lane.b32.xlu1 %v226_v4, %s3751_s29 }
  0x60   : > { %903 = vrot.lane.b32.xlu0 %v227_v7, %s3751_s29  ;;  %905 = vrot.lane.b32.xlu1 %v228_v6, %s3751_s29 }
  0x64   : > { %991 = vperm.xlu0 %2750, %v987_v12   ;;  %996 = vperm.xlu1 %2751, %v988_v13   ;;  %v3132_v12 = vld [vmem:[%s3746_s1 + $0x70] sm:$0xff]  ;;  %v3137_v13 = vld [vmem:[%s3746_s1 + $0x78] sm:$0xff] }
  0x96   : > { %v237_v14 = vpop.permute.xlu0 %236  ;;  %v245_v15 = vpop.permute.xlu1 %244 }
  0x97   : > { %v255_v17 = vsel %vm248_vm1, %v237_v14, %v245_v15  ;;  %v249_v18 = vsel %vm248_vm1, %v245_v15, %v237_v14 }
  0x98   : > { %v262_v26 = vmul.f32 %v3025_v16, %v249_v18  ;;  %v261_v28 = vmul.f32 %v3037_v20, %v255_v17 }
  0x9a   : > { %v239_v22 = vpop.permute.xlu0 %238  ;;  %v247_v23 = vpop.permute.xlu1 %246 }
  0x9b   : > { %v256_v24 = vsel %vm248_vm1, %v239_v22, %v247_v23  ;;  %v250_v25 = vsel %vm248_vm1, %v247_v23, %v239_v22 }
  0x9c   : > { %v264_v27 = vmul.f32 %v3032_v19, %v250_v25  ;;  %v263_v29 = vmul.f32 %v3042_v21, %v256_v24 }
  0x9e   : > { %v373_v30 = vpop.permute.xlu0 %372  ;;  %v375_v31 = vpop.permute.xlu1 %374  ;;  %v268_v32 = vpack.c.bf16 %v264_v27, %v262_v26  ;;  %v267_v33 = vpack.c.bf16 %v263_v29, %v261_v28 }
  0xa0   : > { %292 = vmatprep.subr.bf16.mxu0 %v268_v32  ;;  %v3152_v32 = vld [vmem:[%s3746_s1 + $0xa0] sm:$0xff] }
  0xa1   : > { %293 = vmatpush1.bf16.msra.mxu0 %v267_v33  ;;  %v2756_v33 = vld [vmem:[%s3747_s2 + $0x18] sm:$0xff]  }
  0xa2   : > { %v379_v39 = vpop.permute.xlu0 %378  ;;  %v381_v40 = vpop.permute.xlu1 %380 }
  0xa3   : > { %v382_v41 = vsel %vm274_vm0, %v379_v39, %v373_v30  ;;  %v388_v42 = vsel %vm274_vm0, %v373_v30, %v379_v39  ;;  %v383_v43 = vsel %vm274_vm0, %v381_v40, %v375_v31  ;;  %v389_v44 = vsel %vm274_vm0, %v375_v31, %v381_v40 }
  0xa4   : > { %v395_v45 = vmul.f32 %v3053_v34, %v388_v42  ;;  %v396_v46 = vmul.f32 %v3061_v36, %v382_v41  ;;  %v397_v47 = vmul.f32 %v3066_v37, %v389_v44  ;;  %v398_v48 = vmul.f32 %v3071_v38, %v383_v43  ;;  %2560 = vmatmul.mubr.msk.bf16.vlgmr.msra.gmra.mxu0 %vm274_vm0, %v2752_v35  ;;  %v3160_v35 = vld [vmem:[%s3746_s1 + $0xa8] sm:$0xff]  ;;  %v3167_v41 = vld [vmem:[%s3746_s1 + $0xb0] sm:$0xff]  ;;  %v3172_v42 = vld [vmem:[%s3746_s1 + $0xb8] sm:$0xff] }
  0xa5   : > { %444 = vmatprep.mubr.bf16.mxu0 %v3755_v8 }
  0xa6   : > { %v402_v49 = vpack.c.bf16 %v397_v47, %v395_v45  ;;  %v460_v50 = vpop.permute.xlu0 %459  ;;  %v462_v51 = vpop.permute.xlu1 %461  ;;  %v403_v52 = vpack.c.bf16 %v398_v48, %v396_v46 }
  0xa8   : > { %426 = vmatprep.subr.bf16.mxu0 %v403_v52 }
  0xa9   : > { %427 = vmatpush1.bf16.msra.mxu0 %v402_v49 }
  0xaa   : > { %v466_v58 = vpop.permute.xlu0 %465  ;;  %v468_v59 = vpop.permute.xlu1 %467 }
  0xab   : > { %v470_v60 = vsel %vm469_vm2, %v466_v58, %v460_v50  ;;  %v476_v61 = vsel %vm469_vm2, %v460_v50, %v466_v58  ;;  %v471_v62 = vsel %vm469_vm2, %v468_v59, %v462_v51  ;;  %v477_v63 = vsel %vm469_vm2, %v462_v51, %v468_v59  ;;  %v3185_v59 = vld [vmem:[%s3746_s1 + $0xc0] sm:$0xff] }
  0xac   : > { %v483_v0 = vmul.f32 %v3086_v53, %v476_v61  ;;  %v484_v1 = vmul.f32 %v3094_v55, %v470_v60  ;;  %v485_v2 = vmul.f32 %v3099_v56, %v477_v63  ;;  %v486_v3 = vmul.f32 %v3104_v57, %v471_v62  ;;  %2570 = vmatmul.mubr.msk.bf16.vlgmr.msra.gmra.mxu0 %vm274_vm0, %v2754_v54  ;;  %v2757_v60 = vld [vmem:[%s3747_s2 + $0x28] sm:$0xff]  }
  0xad   : > { %620 = vmatprep.mubr.bf16.mxu0 %v3755_v8  ;;  %v3193_v61 = vld [vmem:[%s3746_s1 + $0xc8] sm:$0xff] }
  0xae   : > { %v490_v4 = vpack.c.bf16 %v485_v2, %v483_v0  ;;  %v548_v5 = vpop.permute.xlu0 %547  ;;  %v550_v6 = vpop.permute.xlu1 %549  ;;  %v491_v7 = vpack.c.bf16 %v486_v3, %v484_v1  ;;  %v3200_v0 = vld [vmem:[%s3746_s1 + $0xd0] sm:$0xff]  ;;  %v3205_v1 = vld [vmem:[%s3746_s1 + $0xd8] sm:$0xff] }
  0xb0   : > { %514 = vmatprep.subr.bf16.mxu1 %v491_v7 }
  0xb1   : > { %515 = vmatpush1.bf16.msra.mxu1 %v490_v4 }
  0xb2   : > { %v554_v14 = vpop.permute.xlu0 %553  ;;  %v556_v15 = vpop.permute.xlu1 %555 }
  0xb3   : > { %v558_v17 = vsel %vm557_vm3, %v554_v14, %v548_v5  ;;  %v564_v18 = vsel %vm557_vm3, %v548_v5, %v554_v14  ;;  %v559_v22 = vsel %vm557_vm3, %v556_v15, %v550_v6  ;;  %v565_v23 = vsel %vm557_vm3, %v550_v6, %v556_v15 }
  0xb4   : > { %v571_v24 = vmul.f32 %v3119_v9, %v564_v18  ;;  %v572_v25 = vmul.f32 %v3127_v11, %v558_v17  ;;  %v573_v26 = vmul.f32 %v3132_v12, %v565_v23  ;;  %v574_v27 = vmul.f32 %v3137_v13, %v559_v22  ;;  %2578 = vmatmul.mubr.msk.bf16.vlgmr.msra.gmra.mxu1 %vm274_vm0, %v2755_v10  ;;  %v3218_v23 = vld [vmem:[%s3746_s1 + $0xe0] sm:$0xff] }
  0xb5   : > { %708 = vmatprep.mubr.bf16.mxu1 %v3755_v8  ;;  %3768 = vst [vmem:[#allocation6_spill] sm:$0xff] %v3218_v23 }
  0xb6   : > { %v578_v28 = vpack.c.bf16 %v573_v26, %v571_v24  ;;  %v636_v29 = vpop.permute.xlu0 %635  ;;  %v638_v30 = vpop.permute.xlu1 %637  ;;  %v579_v31 = vpack.c.bf16 %v574_v27, %v572_v25  ;;  %v2758_v24 = vld [vmem:[%s3747_s2 + $0x30] sm:$0xff]   ;;  %v3226_v25 = vld [vmem:[%s3746_s1 + $0xe8] sm:$0xff] }
  0xb7   : > { %v644_v39 = vsel %vm643_vm4, %v636_v29, %v638_v30  ;;  %v652_v40 = vsel %vm643_vm4, %v638_v30, %v636_v29  ;;  %3769 = vst [vmem:[#allocation7_spill] sm:$0xff] %v3226_v25  ;;  %v3238_v29 = vld [vmem:[%s3746_s1 + $0xf8] sm:$0xff] }
  0xb8   : > { %602 = vmatprep.subr.bf16.mxu0 %v579_v31  ;;  %v659_v47 = vmul.f32 %v3152_v32, %v644_v39  ;;  %v660_v48 = vmul.f32 %v3160_v35, %v652_v40  ;;  %3771 = vst [vmem:[#allocation9_spill] sm:$0xff] %v3238_v29 }
  0xb9   : > { %603 = vmatpush1.bf16.msra.mxu0 %v578_v28  ;;  %v3233_v28 = vld [vmem:[%s3746_s1 + $0xf0] sm:$0xff] }
  0xba   : > { %v640_v43 = vpop.permute.xlu0 %639  ;;  %v642_v44 = vpop.permute.xlu1 %641  ;;  %3770 = vst [vmem:[#allocation8_spill] sm:$0xff] %v3233_v28 }
  0xbb   : > { %v645_v45 = vsel %vm643_vm4, %v640_v43, %v642_v44  ;;  %v653_v46 = vsel %vm643_vm4, %v642_v44, %v640_v43 }
  0xbc   : > { %v661_v49 = vmul.f32 %v3167_v41, %v645_v45  ;;  %v662_v50 = vmul.f32 %v3172_v42, %v653_v46  ;;  %2586 = vmatmul.mubr.msk.bf16.vlgmr.msra.gmra.mxu0 %vm274_vm0, %v2756_v33 }
  0xbd   : > { %796 = vmatprep.mubr.bf16.mxu0 %v3755_v8 }
  0xbe   : > { %v666_v51 = vpack.c.bf16 %v661_v49, %v659_v47  ;;  %v724_v52 = vpop.permute.xlu0 %723  ;;  %v726_v54 = vpop.permute.xlu1 %725  ;;  %v667_v58 = vpack.c.bf16 %v662_v50, %v660_v48  ;;  %v3251_v50 = vld [vmem:[%s3746_s1 + $0x100] sm:$0xff] }
  0xbf   : > { %v732_v62 = vsel %vm731_vm5, %v724_v52, %v726_v54  ;;  %v740_v63 = vsel %vm731_vm5, %v726_v54, %v724_v52  ;;  %3772 = vst [vmem:[#allocation10_spill] sm:$0xff] %v3251_v50  ;;  %v3259_v52 = vld [vmem:[%s3746_s1 + $0x108] sm:$0xff] }
  0xc0   : > { %690 = vmatprep.subr.bf16.mxu1 %v667_v58  ;;  %v747_v6 = vmul.f32 %v3185_v59, %v732_v62  ;;  %v748_v7 = vmul.f32 %v3193_v61, %v740_v63  ;;  %3773 = vst [vmem:[#allocation11_spill] sm:$0xff] %v3259_v52  ;;  %v3271_v62 = vld [vmem:[%s3746_s1 + $0x118] sm:$0xff] }
  0xc1   : > { %691 = vmatpush1.bf16.msra.mxu1 %v666_v51  ;;  %v2759_v51 = vld [vmem:[%s3747_s2 + $0x38] sm:$0xff]   ;;  %3775 = vst [vmem:[#allocation13_spill] sm:$0xff] %v3271_v62 }
  0xc2   : > { %v728_v2 = vpop.permute.xlu0 %727  ;;  %v730_v3 = vpop.permute.xlu1 %729 }
  0xc3   : > { %v733_v4 = vsel %vm731_vm5, %v728_v2, %v730_v3  ;;  %v741_v5 = vsel %vm731_vm5, %v730_v3, %v728_v2 }
  0xc4   : > { %v749_v10 = vmul.f32 %v3200_v0, %v733_v4  ;;  %v750_v14 = vmul.f32 %v3205_v1, %v741_v5  ;;  %2594 = vmatmul.mubr.msk.bf16.vlgmr.msra.gmra.mxu1 %vm274_vm0, %v2757_v60  ;;  %v3266_v60 = vld [vmem:[%s3746_s1 + $0x110] sm:$0xff] }
  0xc5   : > { %884 = vmatprep.mubr.bf16.mxu1 %v3755_v8  ;;  %3774 = vst [vmem:[#allocation12_spill] sm:$0xff] %v3266_v60 }
  0xc6   : > { %v754_v15 = vpack.c.bf16 %v749_v10, %v747_v6  ;;  %v812_v17 = vpop.permute.xlu0 %811  ;;  %v814_v18 = vpop.permute.xlu1 %813  ;;  %v755_v22 = vpack.c.bf16 %v750_v14, %v748_v7 }
  0xc7   : > { %v820_v26 = vsel %vm819_vm6, %v812_v17, %v814_v18  ;;  %v828_v27 = vsel %vm819_vm6, %v814_v18, %v812_v17  ;;  %v2760_v17 = vld [vmem:[%s3747_s2 + $0x40] sm:$0xff]  }
  0xc8   : > { %778 = vmatprep.subr.bf16.mxu0 %v755_v22  ;;  %v835_v40 = vmul.f32 %v3218_v23, %v820_v26  ;;  %v836_v43 = vmul.f32 %v3226_v25, %v828_v27 }
  0xc9   : > { %779 = vmatpush1.bf16.msra.mxu0 %v754_v15 }
  0xca   : > { %v816_v30 = vpop.permute.xlu0 %815  ;;  %v818_v31 = vpop.permute.xlu1 %817 }
  0xcb   : > { %v821_v33 = vsel %vm819_vm6, %v816_v30, %v818_v31  ;;  %v829_v39 = vsel %vm819_vm6, %v818_v31, %v816_v30 }
  0xcc   : > { %v837_v44 = vmul.f32 %v3233_v28, %v821_v33  ;;  %v838_v45 = vmul.f32 %v3238_v29, %v829_v39  ;;  %2602 = vmatmul.mubr.msk.bf16.vlgmr.msra.gmra.mxu0 %vm274_vm0, %v2758_v24 }
  0xcd   : > { %972 = vmatprep.mubr.bf16.mxu0 %v3755_v8 }
  0xce   : > { %v842_v46 = vpack.c.bf16 %v837_v44, %v835_v40  ;;  %v900_v47 = vpop.permute.xlu0 %899  ;;  %v902_v48 = vpop.permute.xlu1 %901  ;;  %v843_v49 = vpack.c.bf16 %v838_v45, %v836_v43 }
  0xcf   : > { %v908_v54 = vsel %vm907_vm7, %v900_v47, %v902_v48  ;;  %v916_v58 = vsel %vm907_vm7, %v902_v48, %v900_v47 }
  0xd0   : > { %866 = vmatprep.subr.bf16.mxu1 %v843_v49  ;;  %v923_v5 = vmul.f32 %v3251_v50, %v908_v54  ;;  %v924_v6 = vmul.f32 %v3259_v52, %v916_v58 }
  0xd1   : > { %867 = vmatpush1.bf16.msra.mxu1 %v842_v46 }
  0xd2   : > { %v904_v63 = vpop.permute.xlu0 %903  ;;  %v906_v2 = vpop.permute.xlu1 %905 }
  0xd3   : > { %v909_v3 = vsel %vm907_vm7, %v904_v63, %v906_v2  ;;  %v917_v4 = vsel %vm907_vm7, %v906_v2, %v904_v63 }
  0xd4   : > { %v925_v7 = vmul.f32 %v3266_v60, %v909_v3  ;;  %v926_v10 = vmul.f32 %v3271_v62, %v917_v4  ;;  %2610 = vmatmul.mubr.msk.bf16.vlgmr.msra.gmra.mxu1 %vm274_vm0, %v2759_v51 }
  0xd5   : > { %1083 = vmatprep.mubr.bf16.mxu1 %v3755_v8 }
  0xd6   : > { %v930_v14 = vpack.c.bf16 %v925_v7, %v923_v5  ;;  %v931_v15 = vpack.c.bf16 %v926_v10, %v924_v6 }
  0xd8   : > { %954 = vmatprep.subr.bf16.mxu0 %v931_v15 }
  0xd9   : > { %955 = vmatpush1.bf16.msra.mxu0 %v930_v14 }
  0xdc   : > { %2618 = vmatmul.mubr.msk.bf16.vlgmr.msra.gmra.mxu0 %vm274_vm0, %v2760_v17 }
  0xdd   : > { %1134 = vmatprep.mubr.bf16.mxu0 %v3755_v8 }
  0xea   : > { %v363_v26 = vpop.f32.mrf.mxu1 }
  0xec   : > { %v365_v30 = vpop.f32.mrf.mxu1 }
  0xee   : > { %v367_v33 = vpop.f32.mrf.mxu1 }
  0xf0   : > { %v369_v40 = vpop.f32.mrf.mxu1 }
 0x164   : > { %v312_v18 = vpop.f32.mrf.mxu0 }
 0x165   : > { %v364_v58 = vadd.f32 %v363_v26, %v312_v18 }
 0x166   : > { %v314_v22 = vpop.f32.mrf.mxu0 }
 0x167   : > { %v366_v3 = vadd.f32 %v365_v30, %v314_v22 }
 0x168   : > { %v316_v24 = vpop.f32.mrf.mxu0 }
 0x169   : > { %v368_v6 = vadd.f32 %v367_v33, %v316_v24 }
 0x16a   : > { %v318_v27 = vpop.f32.mrf.mxu0 }
 0x16b   : > { %v370_v15 = vadd.f32 %v369_v40, %v318_v27 }
 0x16c   : > { %v446_v31 = vpop.f32.mrf.mxu0 }
 0x16d   : > { %v455_v4 = vadd.f32 %v446_v31, %v364_v58 }
 0x16e   : > { %v448_v39 = vpop.f32.mrf.mxu0 }
 0x16f   : > { %v456_v14 = vadd.f32 %v448_v39, %v366_v3 }
 0x170   : > { %v450_v43 = vpop.f32.mrf.mxu0 }
 0x171   : > { %v457_v8 = vadd.f32 %v450_v43, %v368_v6 }
 0x172   : > { %v452_v45 = vpop.f32.mrf.mxu0 }
 0x173   : > { %v458_v52 = vadd.f32 %v452_v45, %v370_v15  ;;  %v992_v45 = vpop.permute.xlu0 %991 }
 0x174   : > { %v534_v44 = vpop.f32.mrf.mxu1 }
 0x175   : > { %v543_v17 = vadd.f32 %v534_v44, %v455_v4 }
 0x176   : > { %v536_v46 = vpop.f32.mrf.mxu1 }
 0x177   : > { %v544_v50 = vadd.f32 %v536_v46, %v456_v14 }
 0x178   : > { %v538_v48 = vpop.f32.mrf.mxu1 }
 0x179   : > { %v545_v25 = vadd.f32 %v538_v48, %v457_v8 }
 0x17a   : > { %v540_v51 = vpop.f32.mrf.mxu1 }
 0x17b   : > { %v546_v22 = vadd.f32 %v540_v51, %v458_v52 }
 0x17c   : > { %v622_v47 = vpop.f32.mrf.mxu0 }
 0x17d   : > { %v631_v29 = vadd.f32 %v622_v47, %v543_v17 }
 0x17e   : > { %v624_v49 = vpop.f32.mrf.mxu0 }
 0x17f   : > { %v632_v23 = vadd.f32 %v624_v49, %v544_v50  ;;  %v997_v49 = vpop.permute.xlu1 %996 }
 0x180   : > { %v626_v63 = vpop.f32.mrf.mxu0 }
 0x181   : > { %v633_v31 = vadd.f32 %v626_v63, %v545_v25 }
 0x182   : > { %v628_v5 = vpop.f32.mrf.mxu0 }
 0x183   : > { %v634_v27 = vadd.f32 %v628_v5, %v546_v22  ;;  %v2655_v22 = vld [vmem:[%s3748_s3 + $0x10] sm:$0xff] }
 0x184   : > { %v710_v54 = vpop.f32.mrf.mxu1 }
 0x185   : > { %v719_v30 = vadd.f32 %v710_v54, %v631_v29 }
 0x186   : > { %v712_v2 = vpop.f32.mrf.mxu1 }
 0x187   : > { %v720_v24 = vadd.f32 %v712_v2, %v632_v23 }
 0x188   : > { %v714_v7 = vpop.f32.mrf.mxu1 }
 0x189   : > { %v721_v40 = vadd.f32 %v714_v7, %v633_v31 }
 0x18a   : > { %v716_v62 = vpop.f32.mrf.mxu1 }
 0x18b   : > { %v722_v46 = vadd.f32 %v716_v62, %v634_v27 }
 0x18c   : > { %v798_v10 = vpop.f32.mrf.mxu0 }
 0x18d   : > { %v807_v33 = vadd.f32 %v798_v10, %v719_v30  ;;  %v2656_v30 = vld [vmem:[%s3748_s3 + $0x18] sm:$0xff] }
 0x18e   : > { %v800_v60 = vpop.f32.mrf.mxu0 }
 0x18f   : > { %v808_v43 = vadd.f32 %v800_v60, %v720_v24 }
 0x190   : > { %v802_v18 = vpop.f32.mrf.mxu0 }
 0x191   : > { %v809_v47 = vadd.f32 %v802_v18, %v721_v40  ;;  %v2762_v18 = vld [vmem:[%s3747_s2 + $0x68] sm:$0xff]  }
 0x192   : > { %v804_v58 = vpop.f32.mrf.mxu0 }
 0x193   : > { %v810_v50 = vadd.f32 %v804_v58, %v722_v46 }
 0x194   : > { %v886_v28 = vpop.f32.mrf.mxu1 }
 0x195   : > { %v895_v44 = vadd.f32 %v886_v28, %v807_v33 }
 0x196   : > { %v888_v26 = vpop.f32.mrf.mxu1 }
 0x197   : > { %v896_v4 = vadd.f32 %v888_v26, %v808_v43  ;;  %v3777_v26 = vmov 0  }
 0x198   : > { %v890_v39 = vpop.f32.mrf.mxu1 }
 0x199   : > { %v897_v52 = vadd.f32 %v890_v39, %v809_v47 }
 0x19a   : > { %v892_v48 = vpop.f32.mrf.mxu1 }
 0x19b   : > { %v898_v51 = vadd.f32 %v892_v48, %v810_v50 }
 0x19c   : > { %v974_v3 = vpop.f32.mrf.mxu0 }
 0x19d   : > { %v983_v8 = vadd.f32 %v974_v3, %v895_v44 }
 0x19e   : > { %v976_v6 = vpop.f32.mrf.mxu0 }
 0x19f   : > { %v999_v29 = vadd.f32 %v992_v45, %v983_v8  ;;  %v984_v25 = vadd.f32 %v976_v6, %v896_v4 }
 0x1a0   : > { %v978_v23 = vpop.f32.mrf.mxu0 }
 0x1a1   : > { %v1003_v54 = vmax.f32 %v999_v29, 0.0  ;;  %v1000_v63 = vadd.f32 %v992_v45, %v984_v25  ;;  %v985_v2 = vadd.f32 %v978_v23, %v897_v52 }
 0x1a2   : > { %v980_v60 = vpop.f32.mrf.mxu0 }
 0x1a3   : > { %v1004_v28 = vmax.f32 %v1000_v63, 0.0  ;;  %v986_v5 = vadd.f32 %v980_v60, %v898_v51  ;;  %v1001_v7 = vadd.f32 %v997_v49, %v985_v2  ;;  %1022 = vrot.lane.b32.xlu1 %v1003_v54, %s2873_s11 }
 0x1a5   : > { %v1002_v62 = vadd.f32 %v997_v49, %v986_v5  ;;  %1393 = vrot.lane.b32.xlu0 %v1004_v28, %s2878_s23  ;;  %v1005_v10 = vmax.f32 %v1001_v7, 0.0  ;;  %v2761_v5 = vld [vmem:[%s3747_s2 + $0x48] sm:$0xff]  }
 0x1a7   : > { %v1006_v14 = vmax.f32 %v1002_v62, 0.0  ;;  %1151 = vrot.lane.b32.xlu1 %v1003_v54, %s2875_s12  ;;  %v1010_v17 = vpack.c.bf16 %v1005_v10, %v1003_v54 }
 0x1a9   : > { %1475 = vrot.lane.b32.xlu0 %v1004_v28, %s2879_s27  ;;  %v1011_v15 = vpack.c.bf16 %v1006_v14, %v1004_v28 }
 0x1ab   : > { %1116 = vmatprep.subr.bf16.mxu0 %v1011_v15  ;;  %1233 = vrot.lane.b32.xlu1 %v1003_v54, %s2876_s20 }
 0x1ac   : > { %1117 = vmatpush1.bf16.msra.mxu0 %v1010_v17 }
 0x1ad   : > { %1557 = vrot.lane.b32.xlu0 %v1004_v28, %s2880_s28 }
 0x1af   : > { %1315 = vrot.lane.b32.xlu1 %v1003_v54, %s3776_s19  ;;  %2626 = vmatmul.mubr.msk.bf16.vlgmr.msra.gmra.mxu0 %vm274_vm0, %v2762_v18 }
 0x1b0   : > { %1294 = vmatprep.mubr.bf16.mxu0 %v3777_v26 }
 0x1b1   : > { %1024 = vrot.lane.b32.xlu0 %v1005_v10, %s2873_s11 }
 0x1b3   : > { %1391 = vrot.lane.b32.xlu1 %v1003_v54, %s2878_s23 }
 0x1b5   : > { %1153 = vrot.lane.b32.xlu0 %v1005_v10, %s2875_s12 }
 0x1b7   : > { %1473 = vrot.lane.b32.xlu1 %v1003_v54, %s2879_s27 }
 0x1b9   : > { %1235 = vrot.lane.b32.xlu0 %v1005_v10, %s2876_s20 }
 0x1bb   : > { %1555 = vrot.lane.b32.xlu1 %v1003_v54, %s2880_s28 }
 0x1bd   : > { %1317 = vrot.lane.b32.xlu0 %v1005_v10, %s3776_s19 }
 0x1bf   : > { %1014 = vrot.lane.b32.xlu1 %v1004_v28, %s2873_s11 }
 0x1c1   : > { %1016 = vrot.lane.b32.xlu0 %v1006_v14, %s2873_s11 }
 0x1c3   : > { %1637 = vrot.lane.b32.xlu1 %v1003_v54, %s3778_s14 }
 0x1c5   : > { %1639 = vrot.lane.b32.xlu0 %v1004_v28, %s3778_s14 }
 0x1c7   : > { %1145 = vrot.lane.b32.xlu1 %v1004_v28, %s2875_s12 }
 0x1c9   : > { %1147 = vrot.lane.b32.xlu0 %v1006_v14, %s2875_s12 }
 0x1cb   : > { %1227 = vrot.lane.b32.xlu1 %v1004_v28, %s2876_s20 }
 0x1cd   : > { %1229 = vrot.lane.b32.xlu0 %v1006_v14, %s2876_s20 }
 0x1cf   : > { %1309 = vrot.lane.b32.xlu1 %v1004_v28, %s3776_s19 }
 0x1d1   : > { %1311 = vrot.lane.b32.xlu0 %v1006_v14, %s3776_s19 }
 0x1d3   : > { %1395 = vrot.lane.b32.xlu1 %v1005_v10, %s2878_s23 }
 0x1d5   : > { %1397 = vrot.lane.b32.xlu0 %v1006_v14, %s2878_s23 }
 0x1d7   : > { %1477 = vrot.lane.b32.xlu1 %v1005_v10, %s2879_s27 }
 0x1d9   : > { %1479 = vrot.lane.b32.xlu0 %v1006_v14, %s2879_s27 }
 0x1db   : > { %1559 = vrot.lane.b32.xlu1 %v1005_v10, %s2880_s28 }
 0x1dd   : > { %1561 = vrot.lane.b32.xlu0 %v1006_v14, %s2880_s28 }
 0x1df   : > { %1641 = vrot.lane.b32.xlu1 %v1005_v10, %s3778_s14 }
 0x1e1   : > { %1643 = vrot.lane.b32.xlu0 %v1006_v14, %s3778_s14 }
 0x1e3   : > { %1724 = vperm.xlu1 %2751, %v2655_v22  }
 0x1e5   : > { %1729 = vperm.xlu0 %2750, %v2656_v30  }
 0x215   : > { %v1023_v31 = vpop.permute.xlu1 %1022 }
 0x217   : > { %v3329_v24 = vpop.permute.xlu0 %1393 }
 0x219   : > { %v1152_v33 = vpop.permute.xlu1 %1151 }
 0x21b   : > { %v3331_v58 = vpop.permute.xlu0 %1475 }
 0x21d   : > { %v1234_v39 = vpop.permute.xlu1 %1233 }
 0x21f   : > { %v3333_v27 = vpop.permute.xlu0 %1557 }
 0x221   : > { %v1316_v40 = vpop.permute.xlu1 %1315 }
 0x223   : > { %v1025_v43 = vpop.permute.xlu0 %1024 }
 0x225   : > { %v1392_v44 = vpop.permute.xlu1 %1391 }
 0x227   : > { %v1154_v3 = vpop.permute.xlu0 %1153 }
 0x229   : > { %v3335_v45 = vpop.permute.xlu1 %1473 }
 0x22b   : > { %v1236_v46 = vpop.permute.xlu0 %1235 }
 0x22d   : > { %v3337_v47 = vpop.permute.xlu1 %1555 }
 0x22f   : > { %v1318_v4 = vpop.permute.xlu0 %1317 }
 0x231   : > { %v1015_v8 = vpop.permute.xlu1 %1014 }
 0x232   : > { %v1026_v48 = vsel %vm248_vm1, %v1023_v31, %v1015_v8  ;;  %v1032_v6 = vsel %vm248_vm1, %v1015_v8, %v1023_v31 }
 0x233   : > { %v1017_v50 = vpop.permute.xlu0 %1016  ;;  %v1034_v25 = vmul.f32 %v1032_v6, %v3037_v20  ;;  %v1035_v23 = vmul.f32 %v1026_v48, %v3025_v16 }
 0x234   : > { %v1027_v52 = vsel %vm248_vm1, %v1025_v43, %v1017_v50  ;;  %v1033_v29 = vsel %vm248_vm1, %v1017_v50, %v1025_v43 }
 0x235   : > { %v1036_v49 = vmul.f32 %v1033_v29, %v3042_v21  ;;  %v1037_v51 = vmul.f32 %v1027_v52, %v3032_v19  ;;  %v3347_v54 = vpop.permute.xlu1 %1637 }
 0x237   : > { %v1041_v63 = vpack.c.bf16 %v1036_v49, %v1034_v25  ;;  %v3349_v2 = vpop.permute.xlu0 %1639  ;;  %v1042_v60 = vpack.c.bf16 %v1037_v51, %v1035_v23 }
 0x239   : > { %1065 = vmatprep.subr.bf16.mxu1 %v1042_v60  ;;  %v1146_v28 = vpop.permute.xlu1 %1145  ;;  %v1489_v60 = vsel %vm731_vm5, %v3331_v58, %v3335_v45 }
 0x23a   : > { %v1155_v20 = vsel %vm274_vm0, %v1152_v33, %v1146_v28  ;;  %v1161_v16 = vsel %vm274_vm0, %v1146_v28, %v1152_v33  ;;  %1066 = vmatpush1.bf16.msra.mxu1 %v1041_v63 }
 0x23b   : > { %v1148_v21 = vpop.permute.xlu0 %1147  ;;  %v1163_v62 = vmul.f32 %v3053_v34, %v1161_v16  ;;  %v1164_v10 = vmul.f32 %v3061_v36, %v1155_v20 }
 0x23c   : > { %v1156_v19 = vsel %vm274_vm0, %v1154_v3, %v1148_v21  ;;  %v1162_v7 = vsel %vm274_vm0, %v1148_v21, %v1154_v3 }
 0x23d   : > { %v1165_v14 = vmul.f32 %v3066_v37, %v1162_v7  ;;  %v1166_v15 = vmul.f32 %v3071_v38, %v1156_v19  ;;  %2624 = vmatmul.mubr.msk.bf16.vlgmr.msra.gmra.mxu1 %vm274_vm0, %v2761_v5  ;;  %v1228_v17 = vpop.permute.xlu1 %1227  ;;  %v1571_v7 = vsel %vm819_vm6, %v3333_v27, %v3337_v47 }
 0x23e   : > { %v1237_v18 = vsel %vm469_vm2, %v1234_v39, %v1228_v17  ;;  %v1243_v22 = vsel %vm469_vm2, %v1228_v17, %v1234_v39  ;;  %1212 = vmatprep.mubr.bf16.mxu1 %v3777_v26  ;;  %v2763_v39 = vld [vmem:[%s3747_s2 + $0x50] sm:$0xff]  }
 0x23f   : > { %v1170_v30 = vpack.c.bf16 %v1165_v14, %v1163_v62  ;;  %v1230_v31 = vpop.permute.xlu0 %1229  ;;  %v1171_v33 = vpack.c.bf16 %v1166_v15, %v1164_v10  ;;  %v1245_v37 = vmul.f32 %v3086_v53, %v1243_v22  ;;  %v1246_v38 = vmul.f32 %v3094_v55, %v1237_v18  ;;  %v3779_v18 = vld [vmem:[#allocation6_spill] sm:$0xff] }
 0x240   : > { %v1238_v34 = vsel %vm469_vm2, %v1236_v46, %v1230_v31  ;;  %v1244_v36 = vsel %vm469_vm2, %v1230_v31, %v1236_v46  ;;  %v1399_v53 = vsel %vm643_vm4, %v1392_v44, %v3329_v24  ;;  %v3781_v31 = vld [vmem:[#allocation8_spill] sm:$0xff] }
 0x241   : > { %v1247_v43 = vmul.f32 %v3099_v56, %v1244_v36  ;;  %v1248_v3 = vmul.f32 %v3104_v57, %v1238_v34  ;;  %1194 = vmatprep.subr.bf16.mxu1 %v1171_v33  ;;  %v1310_v8 = vpop.permute.xlu1 %1309  ;;  %v1407_v56 = vsel %vm643_vm4, %v3329_v24, %v1392_v44  ;;  %v2764_v24 = vld [vmem:[%s3747_s2 + $0x58] sm:$0xff]  }
 0x242   : > { %v1319_v48 = vsel %vm557_vm3, %v1316_v40, %v1310_v8  ;;  %v1325_v6 = vsel %vm557_vm3, %v1310_v8, %v1316_v40  ;;  %1195 = vmatpush1.bf16.msra.mxu1 %v1170_v30  ;;  %v1645_v30 = vsel %vm907_vm7, %v3347_v54, %v3349_v2  ;;  %v3782_v34 = vld [vmem:[#allocation9_spill] sm:$0xff] }
 0x243   : > { %v1252_v46 = vpack.c.bf16 %v1247_v43, %v1245_v37  ;;  %v1312_v55 = vpop.permute.xlu0 %1311  ;;  %v1253_v50 = vpack.c.bf16 %v1248_v3, %v1246_v38  ;;  %v1327_v57 = vmul.f32 %v3119_v9, %v1325_v6  ;;  %v1328_v25 = vmul.f32 %v3127_v11, %v1319_v48  ;;  %v2767_v37 = vld [vmem:[%s3747_s2 + $0x78] sm:$0xff]   ;;  %v3783_v48 = vld [vmem:[#allocation10_spill] sm:$0xff] }
 0x244   : > { %v1320_v52 = vsel %vm557_vm3, %v1318_v4, %v1312_v55  ;;  %v1326_v29 = vsel %vm557_vm3, %v1312_v55, %v1318_v4  ;;  %v1409_v9 = vmul.f32 %v3152_v32, %v1399_v53  ;;  %v1653_v38 = vsel %vm907_vm7, %v3349_v2, %v3347_v54  ;;  %v3784_v55 = vld [vmem:[#allocation11_spill] sm:$0xff]  ;;  %v2768_v54 = vld [vmem:[%s3747_s2 + $0x80] sm:$0xff]  }
 0x245   : > { %v1329_v40 = vmul.f32 %v3132_v12, %v1326_v29  ;;  %v1330_v23 = vmul.f32 %v3137_v13, %v1320_v52  ;;  %2630 = vmatmul.mubr.msk.bf16.vlgmr.msra.gmra.mxu1 %vm274_vm0, %v2763_v39  ;;  %v1396_v49 = vpop.permute.xlu1 %1395  ;;  %1276 = vmatprep.subr.bf16.mxu0 %v1253_v50  ;;  %v1410_v12 = vmul.f32 %v3160_v35, %v1407_v56  ;;  %v2765_v35 = vld [vmem:[%s3747_s2 + $0x60] sm:$0xff]   ;;  %v3785_v56 = vld [vmem:[#allocation12_spill] sm:$0xff] }
 0x246   : > { %1277 = vmatpush1.bf16.msra.mxu0 %v1252_v46  ;;  %1376 = vmatprep.mubr.bf16.mxu1 %v3777_v26  ;;  %v1481_v13 = vsel %vm731_vm5, %v3335_v45, %v3331_v58  ;;  %v1655_v6 = vmul.f32 %v3783_v48, %v1645_v30  ;;  %v1656_v50 = vmul.f32 %v3784_v55, %v1653_v38  ;;  %v3786_v52 = vld [vmem:[#allocation13_spill] sm:$0xff] }
 0x247   : > { %v1334_v44 = vpack.c.bf16 %v1329_v40, %v1327_v57  ;;  %v1398_v4 = vpop.permute.xlu0 %1397  ;;  %v1335_v11 = vpack.c.bf16 %v1330_v23, %v1328_v25  ;;  %v1491_v20 = vmul.f32 %v3185_v59, %v1481_v13  ;;  %v2769_v40 = vld [vmem:[%s3747_s2 + $0x88] sm:$0xff]  }
 0x248   : > { %v1400_v51 = vsel %vm643_vm4, %v1396_v49, %v1398_v4  ;;  %v1408_v63 = vsel %vm643_vm4, %v1398_v4, %v1396_v49 }
 0x249   : > { %v1411_v28 = vmul.f32 %v3167_v41, %v1400_v51  ;;  %v1412_v32 = vmul.f32 %v3172_v42, %v1408_v63  ;;  %1358 = vmatprep.subr.bf16.mxu1 %v1335_v11  ;;  %v1478_v5 = vpop.permute.xlu1 %1477  ;;  %2634 = vmatmul.mubr.msk.bf16.vlgmr.msra.gmra.mxu0 %vm274_vm0, %v2764_v24  ;;  %v1492_v41 = vmul.f32 %v3193_v61, %v1489_v60  ;;  %v2766_v61 = vld [vmem:[%s3747_s2 + $0x70] sm:$0xff]  }
 0x24a   : > { %1359 = vmatpush1.bf16.msra.mxu1 %v1334_v44  ;;  %1458 = vmatprep.mubr.bf16.mxu0 %v3777_v26  ;;  %v1563_v42 = vsel %vm819_vm6, %v3337_v47, %v3333_v27  ;;  %v3780_v47 = vld [vmem:[#allocation7_spill] sm:$0xff] }
 0x24b   : > { %v1416_v16 = vpack.c.bf16 %v1411_v28, %v1409_v9  ;;  %v1480_v21 = vpop.permute.xlu0 %1479  ;;  %v1417_v58 = vpack.c.bf16 %v1412_v32, %v1410_v12  ;;  %v1573_v27 = vmul.f32 %v3779_v18, %v1563_v42 }
 0x24c   : > { %v1482_v45 = vsel %vm731_vm5, %v1478_v5, %v1480_v21  ;;  %v1490_v19 = vsel %vm731_vm5, %v1480_v21, %v1478_v5 }
 0x24d   : > { %v1493_v62 = vmul.f32 %v3200_v0, %v1482_v45  ;;  %v1494_v59 = vmul.f32 %v3205_v1, %v1490_v19  ;;  %2638 = vmatmul.mubr.msk.bf16.vlgmr.msra.gmra.mxu1 %vm274_vm0, %v2765_v35  ;;  %v1560_v10 = vpop.permute.xlu1 %1559  ;;  %1440 = vmatprep.subr.bf16.mxu0 %v1417_v58  ;;  %v1574_v0 = vmul.f32 %v3780_v47, %v1571_v7 }
 0x24e   : > { %1441 = vmatpush1.bf16.msra.mxu0 %v1416_v16  ;;  %1540 = vmatprep.mubr.bf16.mxu1 %v3777_v26 }
 0x24f   : > { %v1498_v14 = vpack.c.bf16 %v1493_v62, %v1491_v20  ;;  %v1562_v15 = vpop.permute.xlu0 %1561  ;;  %v1499_v17 = vpack.c.bf16 %v1494_v59, %v1492_v41 }
 0x250   : > { %v1564_v1 = vsel %vm819_vm6, %v1560_v10, %v1562_v15  ;;  %v1572_v22 = vsel %vm819_vm6, %v1562_v15, %v1560_v10 }
 0x251   : > { %v1575_v33 = vmul.f32 %v3781_v31, %v1564_v1  ;;  %v1576_v36 = vmul.f32 %v3782_v34, %v1572_v22  ;;  %1522 = vmatprep.subr.bf16.mxu1 %v1499_v17  ;;  %2642 = vmatmul.mubr.msk.bf16.vlgmr.msra.gmra.mxu0 %vm274_vm0, %v2766_v61  ;;  %v1642_v3 = vpop.permute.xlu1 %1641 }
 0x252   : > { %1523 = vmatpush1.bf16.msra.mxu1 %v1498_v14  ;;  %1622 = vmatprep.mubr.bf16.mxu0 %v3777_v26 }
 0x253   : > { %v1580_v43 = vpack.c.bf16 %v1575_v33, %v1573_v27  ;;  %v1644_v8 = vpop.permute.xlu0 %1643  ;;  %v1581_v39 = vpack.c.bf16 %v1576_v36, %v1574_v0 }
 0x254   : > { %v1646_v53 = vsel %vm907_vm7, %v1642_v3, %v1644_v8  ;;  %v1654_v46 = vsel %vm907_vm7, %v1644_v8, %v1642_v3 }
 0x255   : > { %v1657_v57 = vmul.f32 %v3785_v56, %v1646_v53  ;;  %v1658_v29 = vmul.f32 %v3786_v52, %v1654_v46  ;;  %2646 = vmatmul.mubr.msk.bf16.vlgmr.msra.gmra.mxu1 %vm274_vm0, %v2767_v37  ;;  %1604 = vmatprep.subr.bf16.mxu0 %v1581_v39 }
 0x256   : > { %1605 = vmatpush1.bf16.msra.mxu0 %v1580_v43  ;;  %1704 = vmatprep.mubr.bf16.mxu1 %v3777_v26 }
 0x257   : > { %v1662_v2 = vpack.c.bf16 %v1657_v57, %v1655_v6  ;;  %v1663_v25 = vpack.c.bf16 %v1658_v29, %v1656_v50 }
 0x259   : > { %2650 = vmatmul.mubr.msk.bf16.vlgmr.msra.gmra.mxu0 %vm274_vm0, %v2768_v54  ;;  %1686 = vmatprep.subr.bf16.mxu1 %v1663_v25 }
 0x25a   : > { %1687 = vmatpush1.bf16.msra.mxu1 %v1662_v2  ;;  %1816 = vmatprep.mubr.bf16.mxu0 %v3777_v26 }
 0x25d   : > { %2654 = vmatmul.mubr.msk.bf16.vlgmr.msra.gmra.mxu1 %vm274_vm0, %v2769_v40 }
 0x25e   : > { %1865 = vmatprep.mubr.bf16.mxu1 %v3777_v26  ;;  %v1725_v50 = vpop.permute.xlu1 %1724 }
 0x26f   : > { %v1136_v23 = vpop.f32.mrf.mxu0 }
 0x271   : > { %v1138_v9 = vpop.f32.mrf.mxu0 }
 0x273   : > { %v1140_v4 = vpop.f32.mrf.mxu0 }
 0x275   : > { %v1142_v13 = vpop.f32.mrf.mxu0 }
 0x2fd   : > { %v1085_v49 = vpop.f32.mrf.mxu1 }
 0x2fe   : > { %v1137_v21 = vadd.f32 %v1136_v23, %v1085_v49 }
 0x2ff   : > { %v1087_v24 = vpop.f32.mrf.mxu1 }
 0x300   : > { %v1139_v42 = vadd.f32 %v1138_v9, %v1087_v24 }
 0x301   : > { %v1089_v44 = vpop.f32.mrf.mxu1 }
 0x302   : > { %v1141_v62 = vadd.f32 %v1140_v4, %v1089_v44 }
 0x303   : > { %v1091_v11 = vpop.f32.mrf.mxu1 }
 0x304   : > { %v1143_v15 = vadd.f32 %v1142_v13, %v1091_v11 }
 0x305   : > { %v1214_v12 = vpop.f32.mrf.mxu1 }
 0x306   : > { %v1223_v45 = vadd.f32 %v1214_v12, %v1137_v21  ;;  %v1730_v12 = vpop.permute.xlu0 %1729  ;;  %v2693_v21 = vld [vmem:[%s3748_s3 + $0x20] sm:$0xff] }
 0x307   : > { %v1216_v51 = vpop.f32.mrf.mxu1 }
 0x308   : > { %v1224_v59 = vadd.f32 %v1216_v51, %v1139_v42 }
 0x309   : > { %v1218_v63 = vpop.f32.mrf.mxu1  ;;  %v1296_v60 = vpop.f32.mrf.mxu0 }
 0x30a   : > { %v1305_v10 = vadd.f32 %v1296_v60, %v1223_v45  ;;  %v1225_v17 = vadd.f32 %v1218_v63, %v1141_v62 }
 0x30b   : > { %v1220_v28 = vpop.f32.mrf.mxu1  ;;  %v1298_v32 = vpop.f32.mrf.mxu0 }
 0x30c   : > { %v1306_v18 = vadd.f32 %v1298_v32, %v1224_v59  ;;  %v1226_v1 = vadd.f32 %v1220_v28, %v1143_v15 }
 0x30d   : > { %v1300_v5 = vpop.f32.mrf.mxu0  ;;  %v1378_v35 = vpop.f32.mrf.mxu1 }
 0x30e   : > { %v1387_v27 = vadd.f32 %v1378_v35, %v1305_v10  ;;  %v1307_v22 = vadd.f32 %v1300_v5, %v1225_v17 }
 0x30f   : > { %v1302_v20 = vpop.f32.mrf.mxu0  ;;  %v1380_v16 = vpop.f32.mrf.mxu1 }
 0x310   : > { %v1388_v30 = vadd.f32 %v1380_v16, %v1306_v18  ;;  %v1308_v36 = vadd.f32 %v1302_v20, %v1226_v1  ;;  %v2771_v16 = vld [vmem:[%s3747_s2 + $0xb0] sm:$0xff]  }
 0x311   : > { %v1382_v58 = vpop.f32.mrf.mxu1  ;;  %v1460_v41 = vpop.f32.mrf.mxu0 }
 0x312   : > { %v1469_v31 = vadd.f32 %v1460_v41, %v1387_v27  ;;  %v1389_v37 = vadd.f32 %v1382_v58, %v1307_v22 }
 0x313   : > { %v1384_v19 = vpop.f32.mrf.mxu1  ;;  %v1462_v7 = vpop.f32.mrf.mxu0 }
 0x314   : > { %v1470_v38 = vadd.f32 %v1462_v7, %v1388_v30  ;;  %v1390_v39 = vadd.f32 %v1384_v19, %v1308_v36 }
 0x315   : > { %v1464_v61 = vpop.f32.mrf.mxu0  ;;  %v1542_v14 = vpop.f32.mrf.mxu1 }
 0x316   : > { %v1551_v43 = vadd.f32 %v1542_v14, %v1469_v31  ;;  %v1471_v48 = vadd.f32 %v1464_v61, %v1389_v37  ;;  %v2779_v31 = vld [vmem:[%s3746_s1] sm:$0xff]  ;;  %v2781_v37 = vld [vmem:[%s3746_s1 + $0x10] sm:$0xff] }
 0x317   : > { %v1466_v47 = vpop.f32.mrf.mxu0  ;;  %v1544_v0 = vpop.f32.mrf.mxu1 }
 0x318   : > { %v1552_v6 = vadd.f32 %v1544_v0, %v1470_v38  ;;  %v1472_v56 = vadd.f32 %v1466_v47, %v1390_v39 }
 0x319   : > { %v1546_v33 = vpop.f32.mrf.mxu1  ;;  %v1624_v34 = vpop.f32.mrf.mxu0 }
 0x31a   : > { %v1633_v53 = vadd.f32 %v1624_v34, %v1551_v43  ;;  %v1553_v57 = vadd.f32 %v1546_v33, %v1471_v48  ;;  %v2780_v34 = vld [vmem:[%s3746_s1 + $0x8] sm:$0xff]  ;;  %v2782_v43 = vld [vmem:[%s3746_s1 + $0x18] sm:$0xff] }
 0x31b   : > { %v1548_v3 = vpop.f32.mrf.mxu1  ;;  %v1626_v8 = vpop.f32.mrf.mxu0 }
 0x31c   : > { %v1634_v52 = vadd.f32 %v1626_v8, %v1552_v6  ;;  %v1554_v25 = vadd.f32 %v1548_v3, %v1472_v56 }
 0x31d   : > { %v1628_v46 = vpop.f32.mrf.mxu0  ;;  %v1706_v55 = vpop.f32.mrf.mxu1 }
 0x31e   : > { %v1715_v29 = vadd.f32 %v1706_v55, %v1633_v53  ;;  %v1635_v40 = vadd.f32 %v1628_v46, %v1553_v57  ;;  %v2770_v46 = vld [vmem:[%s3747_s2 + $0x90] sm:$0xff]  }
 0x31f   : > { %v1630_v54 = vpop.f32.mrf.mxu0  ;;  %v1708_v2 = vpop.f32.mrf.mxu1 }
 0x320   : > { %v1732_v23 = vadd.f32 %v1725_v50, %v1715_v29  ;;  %v1716_v49 = vadd.f32 %v1708_v2, %v1634_v52  ;;  %v1636_v44 = vadd.f32 %v1630_v54, %v1554_v25  ;;  %v2783_v29 = vld [vmem:[%s3746_s1 + $0x20] sm:$0xff]  ;;  %v2784_v2 = vld [vmem:[%s3746_s1 + $0x28] sm:$0xff] }
 0x321   : > { %v1710_v24 = vpop.f32.mrf.mxu1 }
 0x322   : > { %v1736_v9 = vmax.f32 %v1732_v23, 0.0  ;;  %v1733_v4 = vadd.f32 %v1725_v50, %v1716_v49  ;;  %v1717_v11 = vadd.f32 %v1710_v24, %v1635_v40  ;;  %v2785_v40 = vld [vmem:[%s3746_s1 + $0x30] sm:$0xff]  ;;  %v2786_v49 = vld [vmem:[%s3746_s1 + $0x38] sm:$0xff] }
 0x323   : > { %v1712_v13 = vpop.f32.mrf.mxu1 }
 0x324   : > { %v1737_v51 = vmax.f32 %v1733_v4, 0.0  ;;  %v1734_v63 = vadd.f32 %v1730_v12, %v1717_v11  ;;  %v1718_v60 = vadd.f32 %v1712_v13, %v1636_v44  ;;  %1755 = vrot.lane.b32.xlu1 %v1736_v9, %s2873_s11 }
 0x326   : > { %v1735_v28 = vadd.f32 %v1730_v12, %v1718_v60  ;;  %2110 = vrot.lane.b32.xlu0 %v1737_v51, %s2878_s23  ;;  %v1738_v32 = vmax.f32 %v1734_v63, 0.0  ;;  %v2787_v60 = vld [vmem:[%s3746_s1 + $0x40] sm:$0xff] }
 0x328   : > { %v1739_v5 = vmax.f32 %v1735_v28, 0.0  ;;  %1880 = vrot.lane.b32.xlu1 %v1736_v9, %s2875_s12  ;;  %v1743_v20 = vpack.c.bf16 %v1738_v32, %v1736_v9 }
 0x32a   : > { %2188 = vrot.lane.b32.xlu0 %v1737_v51, %s2879_s27  ;;  %v1744_v35 = vpack.c.bf16 %v1739_v5, %v1737_v51 }
 0x32c   : > { %1847 = vmatprep.subr.bf16.mxu1 %v1744_v35  ;;  %1958 = vrot.lane.b32.xlu1 %v1736_v9, %s2876_s20  ;;  %v2789_v35 = vld [vmem:[%s3746_s1 + $0x50] sm:$0xff] }
 0x32d   : > { %1848 = vmatpush1.bf16.msra.mxu1 %v1743_v20 }
 0x32e   : > { %2266 = vrot.lane.b32.xlu0 %v1737_v51, %s2880_s28 }
 0x330   : > { %2036 = vrot.lane.b32.xlu1 %v1736_v9, %s3776_s19  ;;  %2664 = vmatmul.mubr.msk.bf16.vlgmr.msra.gmra.mxu1 %vm274_vm0, %v2771_v16  ;;  %v2790_v16 = vld [vmem:[%s3746_s1 + $0x58] sm:$0xff] }
 0x331   : > { %2019 = vmatprep.mubr.bf16.mxu1 %v3777_v26 }
 0x332   : > { %1757 = vrot.lane.b32.xlu0 %v1738_v32, %s2873_s11 }
 0x334   : > { %2108 = vrot.lane.b32.xlu1 %v1736_v9, %s2878_s23 }
 0x336   : > { %1882 = vrot.lane.b32.xlu0 %v1738_v32, %s2875_s12 }
 0x338   : > { %2186 = vrot.lane.b32.xlu1 %v1736_v9, %s2879_s27 }
 0x33a   : > { %1960 = vrot.lane.b32.xlu0 %v1738_v32, %s2876_s20 }
 0x33c   : > { %2264 = vrot.lane.b32.xlu1 %v1736_v9, %s2880_s28 }
 0x33e   : > { %2038 = vrot.lane.b32.xlu0 %v1738_v32, %s3776_s19 }
 0x340   : > { %1747 = vrot.lane.b32.xlu1 %v1737_v51, %s2873_s11 }
 0x342   : > { %1749 = vrot.lane.b32.xlu0 %v1739_v5, %s2873_s11 }
 0x344   : > { %2342 = vrot.lane.b32.xlu1 %v1736_v9, %s3778_s14 }
 0x346   : > { %2344 = vrot.lane.b32.xlu0 %v1737_v51, %s3778_s14 }
 0x348   : > { %1874 = vrot.lane.b32.xlu1 %v1737_v51, %s2875_s12 }
 0x34a   : > { %1876 = vrot.lane.b32.xlu0 %v1739_v5, %s2875_s12 }
 0x34c   : > { %1952 = vrot.lane.b32.xlu1 %v1737_v51, %s2876_s20 }
 0x34e   : > { %1954 = vrot.lane.b32.xlu0 %v1739_v5, %s2876_s20  ;;  %s3787_s20 = sadd.s32 4294967295, %s2871_s18  }
 0x350   : > { %2030 = vrot.lane.b32.xlu1 %v1737_v51, %s3776_s19 }
 0x352   : > { %2032 = vrot.lane.b32.xlu0 %v1739_v5, %s3776_s19 }
 0x354   : > { %2112 = vrot.lane.b32.xlu1 %v1738_v32, %s2878_s23 }
 0x356   : > { %2114 = vrot.lane.b32.xlu0 %v1739_v5, %s2878_s23  ;;  %s2700_s23 = sshll.u32 %s3787_s20, 5 }
 0x357   : > { %s2481_s9 = scalar_lea.hbm %s3749_s4, %s2700_s23 }
 0x358   : > { %2190 = vrot.lane.b32.xlu1 %v1738_v32, %s2879_s27 }
 0x35a   : > { %2192 = vrot.lane.b32.xlu0 %v1739_v5, %s2879_s27 }
 0x35c   : > { %2268 = vrot.lane.b32.xlu1 %v1738_v32, %s2880_s28 }
 0x35e   : > { %2270 = vrot.lane.b32.xlu0 %v1739_v5, %s2880_s28 }
 0x360   : > { %2346 = vrot.lane.b32.xlu1 %v1738_v32, %s3778_s14  ;;  %v2788_v32 = vld [vmem:[%s3746_s1 + $0x48] sm:$0xff] }
 0x362   : > { %2348 = vrot.lane.b32.xlu0 %v1739_v5, %s3778_s14 }
 0x364   : > { %2424 = vperm.xlu1 %2751, %v2693_v21  }
 0x396   : > { %v1756_v58 = vpop.permute.xlu1 %1755 }
 0x398   : > { %v3501_v41 = vpop.permute.xlu0 %2110 }
 0x39a   : > { %v1881_v42 = vpop.permute.xlu1 %1880 }
 0x39c   : > { %v3503_v45 = vpop.permute.xlu0 %2188 }
 0x39e   : > { %v1959_v19 = vpop.permute.xlu1 %1958 }
 0x3a0   : > { %v3505_v7 = vpop.permute.xlu0 %2266 }
 0x3a2   : > { %v3507_v62 = vpop.permute.xlu1 %2036 }
 0x3a4   : > { %v1758_v59 = vpop.permute.xlu0 %1757 }
 0x3a6   : > { %v3509_v10 = vpop.permute.xlu1 %2108 }
 0x3a8   : > { %v1883_v61 = vpop.permute.xlu0 %1882 }
 0x3aa   : > { %v3511_v14 = vpop.permute.xlu1 %2186 }
 0x3ac   : > { %v1961_v15 = vpop.permute.xlu0 %1960 }
 0x3ae   : > { %v3513_v17 = vpop.permute.xlu1 %2264 }
 0x3b0   : > { %v3515_v18 = vpop.permute.xlu0 %2038 }
 0x3b2   : > { %v1748_v27 = vpop.permute.xlu1 %1747 }
 0x3b3   : > { %v1759_v47 = vsel %vm248_vm1, %v1756_v58, %v1748_v27  ;;  %v1765_v0 = vsel %vm248_vm1, %v1748_v27, %v1756_v58 }
 0x3b4   : > { %v1750_v1 = vpop.permute.xlu0 %1749  ;;  %v1767_v33 = vmul.f32 %v2779_v31, %v1765_v0  ;;  %v1768_v36 = vmul.f32 %v2780_v34, %v1759_v47  ;;  %v2124_v0 = vsel %vm643_vm4, %v3501_v41, %v3509_v10  ;;  %v2792_v31 = vld [vmem:[%s3746_s1 + $0x68] sm:$0xff]  ;;  %v2794_v34 = vld [vmem:[%s3746_s1 + $0x78] sm:$0xff] }
 0x3b5   : > { %v1760_v22 = vsel %vm248_vm1, %v1758_v59, %v1750_v1  ;;  %v1766_v30 = vsel %vm248_vm1, %v1750_v1, %v1758_v59  ;;  %v2791_v1 = vld [vmem:[%s3746_s1 + $0x60] sm:$0xff] }
 0x3b6   : > { %v1769_v38 = vmul.f32 %v2781_v37, %v1766_v30  ;;  %v1770_v3 = vmul.f32 %v2782_v43, %v1760_v22  ;;  %v3533_v8 = vpop.permute.xlu1 %2342 }
 0x3b8   : > { %v1774_v39 = vpack.c.bf16 %v1769_v38, %v1767_v33  ;;  %v3535_v48 = vpop.permute.xlu0 %2344  ;;  %v1775_v6 = vpack.c.bf16 %v1770_v3, %v1768_v36  ;;  %v2795_v38 = vld [vmem:[%s3746_s1 + $0xa0] sm:$0xff] }
 0x3ba   : > { %1798 = vmatprep.subr.bf16.mxu0 %v1775_v6  ;;  %v1875_v53 = vpop.permute.xlu1 %1874 }
 0x3bb   : > { %v1884_v55 = vsel %vm274_vm0, %v1881_v42, %v1875_v53  ;;  %v1890_v50 = vsel %vm274_vm0, %v1875_v53, %v1881_v42  ;;  %1799 = vmatpush1.bf16.msra.mxu0 %v1774_v39  ;;  %v2772_v42 = vld [vmem:[%s3747_s2 + $0x98] sm:$0xff]   ;;  %v2796_v53 = vld [vmem:[%s3746_s1 + $0xa8] sm:$0xff] }
 0x3bc   : > { %v1877_v56 = vpop.permute.xlu0 %1876  ;;  %v1892_v54 = vmul.f32 %v2783_v29, %v1890_v50  ;;  %v1893_v25 = vmul.f32 %v2784_v2, %v1884_v55  ;;  %v2194_v55 = vsel %vm731_vm5, %v3511_v14, %v3503_v45 }
 0x3bd   : > { %v1885_v57 = vsel %vm274_vm0, %v1883_v61, %v1877_v56  ;;  %v1891_v52 = vsel %vm274_vm0, %v1877_v56, %v1883_v61  ;;  %v2116_v61 = vsel %vm643_vm4, %v3509_v10, %v3501_v41  ;;  %v2793_v41 = vld [vmem:[%s3746_s1 + $0x70] sm:$0xff] }
 0x3be   : > { %v1894_v23 = vmul.f32 %v2785_v40, %v1891_v52  ;;  %v1895_v24 = vmul.f32 %v2786_v49, %v1885_v57  ;;  %2662 = vmatmul.mubr.msk.bf16.vlgmr.msra.gmra.mxu0 %vm274_vm0, %v2770_v46  ;;  %v1953_v9 = vpop.permute.xlu1 %1952  ;;  %v2126_v43 = vmul.f32 %v2795_v38, %v2116_v61  ;;  %v2127_v46 = vmul.f32 %v2796_v53, %v2124_v0  ;;  %v2797_v52 = vld [vmem:[%s3746_s1 + $0xb0] sm:$0xff]  ;;  %v2774_v40 = vld [vmem:[%s3747_s2 + $0xa8] sm:$0xff]   ;;  %v2776_v0 = vld [vmem:[%s3747_s2 + $0xc0] sm:$0xff]  }
 0x3bf   : > { %v1962_v44 = vsel %vm469_vm2, %v1959_v19, %v1953_v9  ;;  %v1968_v4 = vsel %vm469_vm2, %v1953_v9, %v1959_v19  ;;  %1941 = vmatprep.mubr.bf16.mxu0 %v3777_v26  ;;  %v2202_v57 = vsel %vm731_vm5, %v3503_v45, %v3511_v14  ;;  %v2799_v45 = vld [vmem:[%s3746_s1 + $0xc0] sm:$0xff]  ;;  %v2800_v9 = vld [vmem:[%s3746_s1 + $0xc8] sm:$0xff]  ;;  %v2805_v61 = vld [vmem:[%s3746_s1 + $0xf0] sm:$0xff] }
 0x3c0   : > { %v1899_v11 = vpack.c.bf16 %v1894_v23, %v1892_v54  ;;  %v1955_v12 = vpop.permute.xlu0 %1954  ;;  %v1900_v13 = vpack.c.bf16 %v1895_v24, %v1893_v25  ;;  %v1970_v28 = vmul.f32 %v2787_v60, %v1968_v4  ;;  %v1971_v5 = vmul.f32 %v2788_v32, %v1962_v44  ;;  %v2798_v54 = vld [vmem:[%s3746_s1 + $0xb8] sm:$0xff] }
 0x3c1   : > { %v1963_v51 = vsel %vm469_vm2, %v1961_v15, %v1955_v12  ;;  %v1969_v63 = vsel %vm469_vm2, %v1955_v12, %v1961_v15  ;;  %v2204_v14 = vmul.f32 %v2799_v45, %v2194_v55  ;;  %v2205_v44 = vmul.f32 %v2800_v9, %v2202_v57  ;;  %v2802_v60 = vld [vmem:[%s3746_s1 + $0xd8] sm:$0xff] }
 0x3c2   : > { %v1972_v20 = vmul.f32 %v2789_v35, %v1969_v63  ;;  %v1973_v21 = vmul.f32 %v2790_v16, %v1963_v51  ;;  %1923 = vmatprep.subr.bf16.mxu0 %v1900_v13  ;;  %v2031_v58 = vpop.permute.xlu1 %2030  ;;  %v2272_v4 = vsel %vm819_vm6, %v3513_v17, %v3505_v7  ;;  %v2280_v13 = vsel %vm819_vm6, %v3505_v7, %v3513_v17  ;;  %v2801_v51 = vld [vmem:[%s3746_s1 + $0xd0] sm:$0xff] }
 0x3c3   : > { %v2040_v19 = vsel %vm557_vm3, %v3507_v62, %v2031_v58  ;;  %v2046_v59 = vsel %vm557_vm3, %v2031_v58, %v3507_v62  ;;  %1924 = vmatpush1.bf16.msra.mxu0 %v1899_v11 }
 0x3c4   : > { %v1977_v15 = vpack.c.bf16 %v1972_v20, %v1970_v28  ;;  %v2033_v27 = vpop.permute.xlu0 %2032  ;;  %v1978_v47 = vpack.c.bf16 %v1973_v21, %v1971_v5  ;;  %v2048_v22 = vmul.f32 %v2791_v1, %v2046_v59  ;;  %v2049_v33 = vmul.f32 %v2792_v31, %v2040_v19  ;;  %v2775_v5 = vld [vmem:[%s3747_s2 + $0xb8] sm:$0xff]   ;;  %v2803_v20 = vld [vmem:[%s3746_s1 + $0xe0] sm:$0xff]  ;;  %v2804_v21 = vld [vmem:[%s3746_s1 + $0xe8] sm:$0xff] }
 0x3c5   : > { %v2041_v62 = vsel %vm557_vm3, %v3515_v18, %v2033_v27  ;;  %v2047_v30 = vsel %vm557_vm3, %v2033_v27, %v3515_v18  ;;  %v2773_v18 = vld [vmem:[%s3747_s2 + $0xa0] sm:$0xff]   ;;  %v2282_v16 = vmul.f32 %v2803_v20, %v2272_v4  ;;  %v2283_v58 = vmul.f32 %v2804_v21, %v2280_v13  ;;  %v2806_v27 = vld [vmem:[%s3746_s1 + $0xf8] sm:$0xff] }
 0x3c6   : > { %v2050_v10 = vmul.f32 %v2793_v41, %v2047_v30  ;;  %v2051_v36 = vmul.f32 %v2794_v34, %v2041_v62  ;;  %2668 = vmatmul.mubr.msk.bf16.vlgmr.msra.gmra.mxu0 %vm274_vm0, %v2772_v42  ;;  %v2113_v37 = vpop.permute.xlu1 %2112  ;;  %2001 = vmatprep.subr.bf16.mxu1 %v1978_v47  ;;  %v2350_v59 = vsel %vm907_vm7, %v3533_v8, %v3535_v48  ;;  %v2431_v13 = vlaneseq }
 0x3c7   : > { %2002 = vmatpush1.bf16.msra.mxu1 %v1977_v15  ;;  %2097 = vmatprep.mubr.bf16.mxu0 %v3777_v26  ;;  %v2358_v1 = vsel %vm907_vm7, %v3535_v48, %v3533_v8  ;;  %v2808_v8 = vld [vmem:[%s3746_s1 + $0x108] sm:$0xff] }
 0x3c8   : > { %v2055_v3 = vpack.c.bf16 %v2050_v10, %v2048_v22  ;;  %v2115_v39 = vpop.permute.xlu0 %2114  ;;  %v2056_v6 = vpack.c.bf16 %v2051_v36, %v2049_v33  ;;  %v2807_v33 = vld [vmem:[%s3746_s1 + $0x100] sm:$0xff]  ;;  %v2361_v48 = vmul.f32 %v2808_v8, %v2358_v1  ;;  %v2809_v36 = vld [vmem:[%s3746_s1 + $0x110] sm:$0xff]  ;;  %v2882_v8 = vmov 1966171168  }
 0x3c9   : > { %v2117_v50 = vsel %vm643_vm4, %v2113_v37, %v2115_v39  ;;  %v2125_v56 = vsel %vm643_vm4, %v2115_v39, %v2113_v37  ;;  %v2360_v41 = vmul.f32 %v2807_v33, %v2350_v59  ;;  %vm2465_vm8 = vcmp.lt.s32.totalorder %v2431_v13, 256 }
 0x3ca   : > { %v2128_v29 = vmul.f32 %v2797_v52, %v2117_v50  ;;  %v2129_v2 = vmul.f32 %v2798_v54, %v2125_v56  ;;  %2079 = vmatprep.subr.bf16.mxu0 %v2056_v6  ;;  %v2191_v25 = vpop.permute.xlu1 %2190  ;;  %2672 = vmatmul.mubr.msk.bf16.vlgmr.msra.gmra.mxu1 %vm274_vm0, %v2773_v18  ;;  %v2810_v18 = vld [vmem:[%s3746_s1 + $0x118] sm:$0xff]  ;;  %v2778_v6 = vld [vmem:[%s3747_s2 + $0xd0] sm:$0xff]  }
 0x3cb   : > { %2080 = vmatpush1.bf16.msra.mxu0 %v2055_v3  ;;  %2175 = vmatprep.mubr.bf16.mxu1 %v3777_v26 }
 0x3cc   : > { %v2133_v23 = vpack.c.bf16 %v2128_v29, %v2126_v43  ;;  %v2193_v49 = vpop.permute.xlu0 %2192  ;;  %v2134_v24 = vpack.c.bf16 %v2129_v2, %v2127_v46  ;;  %v2777_v43 = vld [vmem:[%s3747_s2 + $0xc8] sm:$0xff]  }
 0x3cd   : > { %v2195_v11 = vsel %vm731_vm5, %v2191_v25, %v2193_v49  ;;  %v2203_v12 = vsel %vm731_vm5, %v2193_v49, %v2191_v25 }
 0x3ce   : > { %v2206_v63 = vmul.f32 %v2801_v51, %v2195_v11  ;;  %v2207_v28 = vmul.f32 %v2802_v60, %v2203_v12  ;;  %2676 = vmatmul.mubr.msk.bf16.vlgmr.msra.gmra.mxu0 %vm274_vm0, %v2774_v40  ;;  %v2269_v32 = vpop.permute.xlu1 %2268  ;;  %2157 = vmatprep.subr.bf16.mxu1 %v2134_v24 }
 0x3cf   : > { %2158 = vmatpush1.bf16.msra.mxu1 %v2133_v23  ;;  %2253 = vmatprep.mubr.bf16.mxu0 %v3777_v26 }
 0x3d0   : > { %v2211_v7 = vpack.c.bf16 %v2206_v63, %v2204_v14  ;;  %v2271_v17 = vpop.permute.xlu0 %2270  ;;  %v2212_v35 = vpack.c.bf16 %v2207_v28, %v2205_v44 }
 0x3d1   : > { %v2273_v42 = vsel %vm819_vm6, %v2269_v32, %v2271_v17  ;;  %v2281_v19 = vsel %vm819_vm6, %v2271_v17, %v2269_v32 }
 0x3d2   : > { %v2284_v15 = vmul.f32 %v2805_v61, %v2273_v42  ;;  %v2285_v47 = vmul.f32 %v2806_v27, %v2281_v19  ;;  %2235 = vmatprep.subr.bf16.mxu0 %v2212_v35  ;;  %2680 = vmatmul.mubr.msk.bf16.vlgmr.msra.gmra.mxu1 %vm274_vm0, %v2775_v5  ;;  %v2347_v62 = vpop.permute.xlu1 %2346  ;;  %v2432_v35 = vshrl.u32 %v2431_v13, 7 }
 0x3d3   : > { %2236 = vmatpush1.bf16.msra.mxu0 %v2211_v7  ;;  %2331 = vmatprep.mubr.bf16.mxu1 %v3777_v26 }
 0x3d4   : > { %v2289_v22 = vpack.c.bf16 %v2284_v15, %v2282_v16  ;;  %v2349_v30 = vpop.permute.xlu0 %2348  ;;  %v2290_v31 = vpack.c.bf16 %v2285_v47, %v2283_v58  ;;  %v2433_v15 = vsub.s32 0, %v2432_v35 }
 0x3d5   : > { %v2351_v10 = vsel %vm907_vm7, %v2347_v62, %v2349_v30  ;;  %v2359_v34 = vsel %vm907_vm7, %v2349_v30, %v2347_v62  ;;  %v2437_v62 = vsub.s32 1, %v2432_v35 }
 0x3d6   : > { %v2362_v37 = vmul.f32 %v2809_v36, %v2351_v10  ;;  %v2363_v38 = vmul.f32 %v2810_v18, %v2359_v34  ;;  %2684 = vmatmul.mubr.msk.bf16.vlgmr.msra.gmra.mxu0 %vm274_vm0, %v2776_v0  ;;  %2313 = vmatprep.subr.bf16.mxu1 %v2290_v31  ;;  %v2429_v0 = vld [vmem:[%s2969_s10] ss:$8 sm:$0x3]  ;;  %s2556_s10 = sshll.u32 %s2966_s8, 1 }
 0x3d7   : > { %2314 = vmatpush1.bf16.msra.mxu1 %v2289_v22  ;;  %2409 = vmatprep.mubr.bf16.mxu0 %v3777_v26  ;;  %v2434_v34 = vrot.slane %v2429_v0, %v2433_v15  ;;  %s221_s27 = scalar_lea.vmem [#allocation3], %s2556_s10 }
 0x3d8   : > { %v2367_v3 = vpack.c.bf16 %v2362_v37, %v2360_v41  ;;  %v2368_v39 = vpack.c.bf16 %v2363_v38, %v2361_v48  ;;  %v2449_v48 = vunpack.c.l.s4 %v2882_v8  ;;  %s2483_s28 = sshll.u32 %s221_s27, 4  ;;  %s2484_s28 = int_to_ptr.vmem [resolvable:$true] %s2483_s28 }
 0x3d9   : > { %s2811_s30 = scalar_lea.vmem %s2484_s28, 32  ;;  %p2818_p2 = scmp.lt.s32.totalorder %s2484_s28, %s2816_s6 }
 0x3da   : > { %2688 = vmatmul.mubr.msk.bf16.vlgmr.msra.gmra.mxu1 %vm274_vm0, %v2777_v43  ;;  %2391 = vmatprep.subr.bf16.mxu0 %v2368_v39  ;;  %v2438_v43 = vrot.slane %v2429_v0, %v2437_v62  ;;  %p2812_p13 = scmp.ne.s32.totalorder %s2484_s28, %s2811_s30  ;;  %p2819_p3 = scmp.lt.s32.totalorder %s2817_s7, %s2811_s30 }
 0x3db   : > { %2392 = vmatpush1.bf16.msra.mxu0 %v2367_v3 }
 0x3dc   : > { %p2813_p0 = pnand %p2812_p13, %p2947_p6  ;;  %p2820_p4 = por %p2819_p3, %p2818_p2 }
 0x3de   : > { %2692 = vmatmul.mubr.msk.bf16.vlgmr.msra.gmra.mxu0 %vm274_vm0, %v2778_v6  ;;  %p2814_p1 = pneg %p2813_p0 }
 0x3df   : > { %v2425_v33 = vpop.permute.xlu1 %2424 }
 0x3e0   : > { %p2821_p5 = pnand %p2820_p4, %p2814_p1 }
 0x3f0   : > { %v1867_v53 = vpop.f32.mrf.mxu1 }
 0x3f2   : > { %v1869_v46 = vpop.f32.mrf.mxu1 }
 0x3f4   : > { %v1871_v55 = vpop.f32.mrf.mxu1 }
 0x3f6   : > { %v1872_v50 = vpop.f32.mrf.mxu1 }
 0x47e   : > { %v1818_v56 = vpop.f32.mrf.mxu0 }
 0x47f   : > { %v1868_v9 = vadd.f32 %v1867_v53, %v1818_v56  ;;  %v2450_v53 = vunpack.c.0.s8 %v2449_v48 }
 0x480   : > { %v1820_v57 = vpop.f32.mrf.mxu0 }
 0x481   : > { %v1870_v11 = vadd.f32 %v1869_v46, %v1820_v57  ;;  %v2453_v57 = vsub.s32 %v2450_v53, %v2432_v35 }
 0x482   : > { %v1822_v52 = vpop.f32.mrf.mxu0 }
 0x484   : > { %v1823_v26 = vpop.f32.mrf.mxu0 }
 0x486   : > { %v1943_v29 = vpop.f32.mrf.mxu0 }
 0x487   : > { %v1950_v12 = vadd.f32 %v1943_v29, %v1868_v9 }
 0x488   : > { %v1945_v54 = vpop.f32.mrf.mxu0 }
 0x489   : > { %v1951_v60 = vadd.f32 %v1945_v54, %v1870_v11 }
 0x48a   : > { %v1947_v2 = vpop.f32.mrf.mxu0  ;;  %v2021_v25 = vpop.f32.mrf.mxu1 }
 0x48b   : > { %v2028_v28 = vadd.f32 %v2021_v25, %v1950_v12 }
 0x48c   : > { %v1948_v40 = vpop.f32.mrf.mxu0  ;;  %v2023_v45 = vpop.f32.mrf.mxu1 }
 0x48d   : > { %v2029_v7 = vadd.f32 %v2023_v45, %v1951_v60 }
 0x48e   : > { %v2025_v14 = vpop.f32.mrf.mxu1  ;;  %v2099_v23 = vpop.f32.mrf.mxu0 }
 0x48f   : > { %v2106_v17 = vadd.f32 %v2099_v23, %v2028_v28 }
 0x490   : > { %v2026_v49 = vpop.f32.mrf.mxu1  ;;  %v2101_v24 = vpop.f32.mrf.mxu0 }
 0x491   : > { %v2107_v21 = vadd.f32 %v2101_v24, %v2029_v7 }
 0x492   : > { %v2103_v44 = vpop.f32.mrf.mxu0  ;;  %v2177_v4 = vpop.f32.mrf.mxu1 }
 0x493   : > { %v2184_v58 = vadd.f32 %v2177_v4, %v2106_v17 }
 0x494   : > { %v2104_v51 = vpop.f32.mrf.mxu0  ;;  %v2179_v63 = vpop.f32.mrf.mxu1 }
 0x495   : > { %v2185_v59 = vadd.f32 %v2179_v63, %v2107_v21 }
 0x496   : > { %v2181_v32 = vpop.f32.mrf.mxu1  ;;  %v2255_v5 = vpop.f32.mrf.mxu0 }
 0x497   : > { %v2262_v61 = vadd.f32 %v2255_v5, %v2184_v58 }
 0x498   : > { %v2182_v20 = vpop.f32.mrf.mxu1  ;;  %v2257_v16 = vpop.f32.mrf.mxu0 }
 0x499   : > { %v2263_v1 = vadd.f32 %v2257_v16, %v2185_v59 }
 0x49a   : > { %v2259_v42 = vpop.f32.mrf.mxu0  ;;  %v2333_v19 = vpop.f32.mrf.mxu1 }
 0x49b   : > { %v2340_v22 = vadd.f32 %v2333_v19, %v2262_v61 }
 0x49c   : > { %v2260_v27 = vpop.f32.mrf.mxu0  ;;  %v2335_v47 = vpop.f32.mrf.mxu1 }
 0x49d   : > { %v2341_v41 = vadd.f32 %v2335_v47, %v2263_v1 }
 0x49e   : > { %v2411_v30 = vpop.f32.mrf.mxu0  ;;  %v2337_v31 = vpop.f32.mrf.mxu1 }
 0x49f   : > { %v2418_v10 = vadd.f32 %v2411_v30, %v2340_v22 }
 0x4a0   : > { %v2413_v36 = vpop.f32.mrf.mxu0  ;;  %v2338_v37 = vpop.f32.mrf.mxu1 }
 0x4a1   : > { %v2427_v18 = vadd.f32 %v2425_v33, %v2418_v10  ;;  %v2419_v38 = vadd.f32 %v2413_v36, %v2341_v41 }
 0x4a2   : > { %v2415_v3 = vpop.f32.mrf.mxu0 }
 0x4a3   : > { %v2441_v39 = vadd.f32 %v2434_v34, %v2427_v18  ;;  %v2428_v6 = vadd.f32 %v2425_v33, %v2419_v38 }
 0x4a4   : > { %v2416_v46 = vpop.f32.mrf.mxu0 }
 0x4a5   : > { %v2442_v55 = vadd.f32 %v2438_v43, %v2428_v6  ;;  %v2443_v50 = vmax.f32 %v2441_v39, 0.0 }
 0x4a7   : > { %v2444_v56 = vmax.f32 %v2442_v55, 0.0 }
 0x4a9   : > { %v2447_v52 = vcombine.low %v2443_v50, %v2444_v56 }
 0x4ab   : > { %v2454_v26 = vrot.slane %v2447_v52, %v2453_v57 }
 0x4ad   : > { %v2461_v29 = vrot.slane %v2454_v26, %v2453_v57 }
 0x4af   : > { %2467 = vst.msk [vmem:[%s221_s27] sm:$0x3] %vm2465_vm8, %v2461_v29 }
 0x4b0   : > { %2824 = shalt.err (!%p2821_p5)
}
 0x4b1   : > { %s2825_s22 = scalar_lea.hbm %s2481_s9, 32  ;;  %s2829_s11 = scalar_lea.hbm %s3749_s4, 64 }
 0x4b2   : > { %p2826_p7 = scmp.ne.s32.totalorder %s2481_s9, %s2825_s22  ;;  %p2830_p12 = scmp.lt.s32.totalorder %s2481_s9, %s3749_s4 }
 0x4b3   : > { %p2831_p13 = scmp.lt.s32.totalorder %s2829_s11, %s2825_s22 }
 0x4b4   : > { %p2827_p10 = pnand %p2826_p7, %p2947_p6 }
 0x4b5   : > { %p2832_p0 = por %p2831_p13, %p2830_p12 }
 0x4b6   : > { %p2828_p11 = pneg %p2827_p10 }
 0x4b8   : > { %p2833_p9 = pnand %p2832_p0, %p2828_p11 }
 0x4ba   : > { %2836 = shalt.err (!%p2833_p9)
}
 0x4bb   : > { %2701 = dma.vmem_to_hbm [thread:$0]  (%p2947_p6), %s2484_s28, 32, %s2481_s9, %s2469_s13  }
 0x4bc PF: > { %s2495_s20 = sand.u32 1, %s2859_s15   ;;  %p3788_p1 = scmp.ge.s32.totalorder %s2871_s18, 2 }
 0x4bd   : > { %s2496_s23 = scalar_lea.sflag [#allocation4], %s2495_s20 }
 0x4be   : > { %p2704_p2 = pnand %p3788_p1, %p2951_p8 }
 0x4c0   : > { %p2705_p3 = pneg %p2704_p2 }
 0x4c2   : > { %2854 = dma.done.wait (%p2705_p3), %s2496_s23, 32  }
 0x4c3   : > { %2856 = vsyncadd (%p2705_p3), %s2496_s23, 4294967264  ;;  %p14_p9 = scmp.ge.s32.totalorder %s2932_s21, 4   ;;  %s3789_s15 = smov %s2863_s16 }
 0x4c4   : > { %s3790_s16 = smov %s2867_s17  ;;  %s3791_s17 = smov %s2945_s24 }
 0x4c5   : > { %s3792_s18 = smov %s2932_s21  ;;  %16 = sbr.rel (!%p14_p9) target bundleno = 3 (0x3), region = 134 }
 0x4ca   :  { %2501 = vsyncpa [#allocation4], 1 }
 0x4cb   :  { %2503 = vsyncpa [#allocation4 + $0x1], 1 }

</bundles_post_ra>
